<compile_context>
chip_gen: v5e
topology: v5e:2x2
jax: 0.10.0
libtpu: 0.0.40
codegen_flags: <defaults>
</compile_context>

<pallas_src>
import math

import jax
import jax.numpy as jnp
from jax.experimental import pallas as pl
from jax.experimental.pallas import tpu as pltpu


CFG = dict(vocab=100, hidden=32, layers=2, heads=2, intermediate=64,
           max_pos=16, type_vocab=2, num_labels=2)
LANE = 128   # classifier output / packed-bias slab width (lane-dense)

# packed small-param slab row layout
ROW_EMB_G, ROW_EMB_B, ROW_POOL_B, ROW_CLS_B = 0, 1, 2, 3
ROW_L0 = 4
ROWS_PER_LAYER = 8   # bqkv, bo, ln1_g, ln1_b, b1, b2, ln2_g, ln2_b


# ----------------------------- fused kernel -------------------------------

def _make_kernel(B, S, H, nH, L, I, num_labels):
    dh = H // nH
    scale = 1.0 / math.sqrt(dh)
    eps = 1e-12
    NEG = -1e30

    def layer_norm(x, g, b):
        mean = jnp.mean(x, axis=-1, keepdims=True)
        var = jnp.mean(jnp.square(x - mean), axis=-1, keepdims=True)
        return (x - mean) * jax.lax.rsqrt(var + eps) * g + b

    def gelu(x):
        # TODO(synk): HF BERT default is the exact erf GELU; tanh approx used here.
        return 0.5 * x * (1.0 + jnp.tanh(0.7978845608028654
                                         * (x + 0.044715 * x * x * x)))

    def kernel(emb_ref, maskb_ref, bias_ref,
               wqkv_ref, wo_ref, w1_ref, w2_ref, poolw_ref, clsw_ref,
               labels_ref, out_ref):
        b_idx = pl.program_id(0)

        bias = bias_ref[...]                                  # (rows, 128) f32

        def brow(r, width):
            return bias[r:r + 1, :width]                      # (1, width) f32

        # --- embedding layernorm for this example (f32) ---
        x = layer_norm(emb_ref[...], brow(ROW_EMB_G, H), brow(ROW_EMB_B, H))  # (S, H)
        mask_row = maskb_ref[0]                               # (1, S) additive bias, f32

        # --- encoder layers (static unroll; weights resident in VMEM) ---
        for l in range(L):
            r = ROW_L0 + ROWS_PER_LAYER * l

            # fused QKV projection: bf16 operands, f32 accumulation
            qkv = jnp.dot(x.astype(jnp.bfloat16), wqkv_ref[l],
                          preferred_element_type=jnp.float32) + brow(r + 0, 3 * H)
            q = (qkv[:, 0:H] * scale).astype(jnp.bfloat16)    # pre-scaled queries
            k = qkv[:, H:2 * H].astype(jnp.bfloat16)
            v = qkv[:, 2 * H:3 * H].astype(jnp.bfloat16)

            # per-head scores stacked along sublanes -> one fused softmax
            s_heads = [
                jax.lax.dot_general(q[:, h * dh:(h + 1) * dh],
                                    k[:, h * dh:(h + 1) * dh],
                                    (((1,), (1,)), ((), ())),
                                    preferred_element_type=jnp.float32)
                for h in range(nH)]
            s = jnp.concatenate(s_heads, axis=0) + mask_row   # (nH*S, S) f32
            s = s - jnp.max(s, axis=-1, keepdims=True)
            p = jnp.exp(s)
            p = p * pl.reciprocal(jnp.sum(p, axis=-1, keepdims=True), approx=True)
            p = p.astype(jnp.bfloat16)

            # context assembled as a value (no VMEM scratch roundtrip)
            ctx = jnp.concatenate(
                [jnp.dot(p[h * S:(h + 1) * S, :], v[:, h * dh:(h + 1) * dh],
                         preferred_element_type=jnp.float32)
                 for h in range(nH)], axis=1)                 # (S, H) f32

            attn = jnp.dot(ctx.astype(jnp.bfloat16), wo_ref[l],
                           preferred_element_type=jnp.float32) + brow(r + 1, H)
            x = layer_norm(x + attn, brow(r + 2, H), brow(r + 3, H))

            ff = gelu(jnp.dot(x.astype(jnp.bfloat16), w1_ref[l],
                              preferred_element_type=jnp.float32) + brow(r + 4, I))
            ff = jnp.dot(ff.astype(jnp.bfloat16), w2_ref[l],
                         preferred_element_type=jnp.float32) + brow(r + 5, H)
            x = layer_norm(x + ff, brow(r + 6, H), brow(r + 7, H))

        # --- pooler: tanh(W_p * h_[CLS] + b_p) — CLS row sliced as a value ---
        pooled = jnp.tanh(
            jnp.dot(x[0:1, :].astype(jnp.bfloat16), poolw_ref[...],
                    preferred_element_type=jnp.float32) + brow(ROW_POOL_B, H))  # (1, H)

        # --- classifier: lane-dense (1, 128) row, first num_labels cols valid ---
        logits_full = (jnp.dot(pooled.astype(jnp.bfloat16), clsw_ref[...],
                               preferred_element_type=jnp.float32)
                       + brow(ROW_CLS_B, LANE))               # (1, LANE) f32

        # --- per-example cross-entropy over the valid columns (vectorized) ---
        col = jax.lax.broadcasted_iota(jnp.int32, (1, LANE), 1)
        valid = col < num_labels
        lm = jnp.where(valid, logits_full, NEG)
        m = jnp.max(lm, axis=-1, keepdims=True)
        z = lm - m
        lse = jnp.log(jnp.sum(jnp.where(valid, jnp.exp(z), 0.0),
                              axis=-1, keepdims=True))
        logp = z - lse                                        # (1, LANE)
        lab = labels_ref[b_idx]                               # SMEM scalar
        nll = -jnp.sum(jnp.where(col == lab, logp, 0.0),
                       axis=-1, keepdims=True)                # (1, 1)

        # single lane-dense store: cols [0, num_labels) = logits, col 127 = NLL
        out_row = jnp.where(valid, logits_full, 0.0)
        out_row = jnp.where(col == LANE - 1, nll, out_row)
        out_ref[0] = out_row

    return kernel


def fused_forward(params, cfg, emb, mask_bias3, labels):
    B = mask_bias3.shape[0]
    S = mask_bias3.shape[2]
    H, L = cfg["hidden"], cfg["layers"]
    nH, I, C = cfg["heads"], cfg["intermediate"], cfg["num_labels"]

    kernel = _make_kernel(B, S, H, nH, L, I, C)

    def vmem_full():
        return pl.BlockSpec(memory_space=pltpu.MemorySpace.VMEM)

    smem_full = pl.BlockSpec(memory_space=pltpu.MemorySpace.SMEM)

    out = pl.pallas_call(
        kernel,
        out_shape=jax.ShapeDtypeStruct((B, 1, LANE), jnp.float32),
        grid=(B,),
        in_specs=[
            pl.BlockSpec((S, H), lambda b: (b, 0)),          # this example's rows
            pl.BlockSpec((1, 1, S), lambda b: (b, 0, 0)),    # additive mask bias
            vmem_full(),                                      # packed small params
            vmem_full(), vmem_full(), vmem_full(), vmem_full(),  # wqkv, wo, w1, w2
            vmem_full(), vmem_full(),                         # pool_w, cls_w_pad
            smem_full,                                        # labels (SMEM scalars)
        ],
        out_specs=pl.BlockSpec((1, 1, LANE), lambda b: (b, 0, 0)),
        compiler_params=pltpu.CompilerParams(
            dimension_semantics=("parallel",)),               # 2 TCs on v7x
    )(emb, mask_bias3, params["bias_slab"],
      params["wqkv"], params["wo"], params["w1"], params["w2"],
      params["pool_w"], params["cls_w_pad"], labels)
    return out                                                # (B, 1, LANE)


# --------------------------- model construction ---------------------------

def init_params(key, cfg):
    H, I, L, C = cfg["hidden"], cfg["intermediate"], cfg["layers"], cfg["num_labels"]
    std = 0.02

    def nrm(k, shape):
        return std * jax.random.normal(k, shape, dtype=jnp.float32)

    keys = iter(jax.random.split(key, 16 + 8 * L))
    p = {
        "word_emb": nrm(next(keys), (cfg["vocab"], H)),
        "pos_emb": nrm(next(keys), (cfg["max_pos"], H)),
        "type_emb": nrm(next(keys), (cfg["type_vocab"], H)),
        "pool_w": nrm(next(keys), (H, H)).astype(jnp.bfloat16),
    }
    cls_w = nrm(next(keys), (H, C))
    p["cls_w_pad"] = (jnp.zeros((H, LANE), jnp.float32)
                      .at[:, :C].set(cls_w).astype(jnp.bfloat16))

    wqkv, wo, w1, w2 = [], [], [], []
    for _ in range(L):
        wq, wk, wv = (nrm(next(keys), (H, H)), nrm(next(keys), (H, H)),
                      nrm(next(keys), (H, H)))
        wqkv.append(jnp.concatenate([wq, wk, wv], axis=1))   # fused (H, 3H)
        wo.append(nrm(next(keys), (H, H)))
        w1.append(nrm(next(keys), (H, I)))
        w2.append(nrm(next(keys), (I, H)))
    p["wqkv"] = jnp.stack(wqkv).astype(jnp.bfloat16)
    p["wo"] = jnp.stack(wo).astype(jnp.bfloat16)
    p["w1"] = jnp.stack(w1).astype(jnp.bfloat16)
    p["w2"] = jnp.stack(w2).astype(jnp.bfloat16)

    # packed f32 slab of all small params: (4 + 8L, 128), one row per param
    def row(vec):
        return jnp.zeros((1, LANE), jnp.float32).at[0, :vec.shape[0]].set(vec)

    rows = [row(jnp.ones((H,), jnp.float32)),     # emb_ln_g
            row(jnp.zeros((H,), jnp.float32)),    # emb_ln_b
            row(jnp.zeros((H,), jnp.float32)),    # pool_b
            row(jnp.zeros((LANE,), jnp.float32))]  # cls_b_pad
    for _ in range(L):
        rows += [row(jnp.zeros((3 * H,), jnp.float32)),  # bqkv
                 row(jnp.zeros((H,), jnp.float32)),      # bo
                 row(jnp.ones((H,), jnp.float32)),       # ln1_g
                 row(jnp.zeros((H,), jnp.float32)),      # ln1_b
                 row(jnp.zeros((I,), jnp.float32)),      # b1
                 row(jnp.zeros((H,), jnp.float32)),      # b2
                 row(jnp.ones((H,), jnp.float32)),       # ln2_g
                 row(jnp.zeros((H,), jnp.float32))]      # ln2_b
    p["bias_slab"] = jnp.concatenate(rows, axis=0)
    return p


def task1_forward(params, cfg, input_ids, token_type_ids, attention_mask, labels=None):
    B, S = input_ids.shape
    H = cfg["hidden"]

    # Embedding lookups are pure index gathers; kept in XLA as glue.
    # TODO(synk): could become a Pallas DMA-gather kernel; pointless at vocab=100.
    pos_ids = jnp.arange(S)
    emb = (params["word_emb"][input_ids]
           + params["pos_emb"][pos_ids][None, :, :]
           + params["type_emb"][token_type_ids]).astype(jnp.float32)
    emb = emb.reshape(B * S, H)

    mask_bias = ((1.0 - attention_mask.astype(jnp.float32)) * -1e9).reshape(B, 1, S)
    lab = (jnp.zeros((B,), jnp.int32) if labels is None
           else labels.reshape(-1).astype(jnp.int32))

    out = fused_forward(params, cfg, emb, mask_bias, lab)[:, 0, :]   # (B, LANE)
    logits = out[:, :cfg["num_labels"]]
    if labels is None:
        return logits, None
    loss = jnp.mean(out[:, LANE - 1])       # mean CE over the batch
    return logits, loss


# --------------------------------- main -----------------------------------

if __name__ == "__main__":
    key = jax.random.PRNGKey(0)
    k_param, k_ids, k_types, k_labels = jax.random.split(key, 4)

    B, S = 2, 8
    params = init_params(k_param, CFG)

    input_ids = jax.random.randint(k_ids, (B, S), 0, CFG["vocab"], dtype=jnp.int32)
    token_type_ids = jax.random.randint(k_types, (B, S), 0, CFG["type_vocab"],
                                        dtype=jnp.int32)
    attention_mask = jnp.ones((B, S), jnp.int32).at[1, S - 2:].set(0)  # pad tail of ex. 1
    labels = jax.random.randint(k_labels, (B,), 0, CFG["num_labels"], dtype=jnp.int32)

    @jax.jit
    def run(ids, types, mask, labs):
        return task1_forward(params, CFG, ids, types, mask, labs)

    logits, loss = run(input_ids, token_type_ids, attention_mask, labels)
    jax.block_until_ready((logits, loss))

    assert logits.shape == (B, CFG["num_labels"]) and loss.shape == ()
    assert bool(jnp.all(jnp.isfinite(logits))) and bool(jnp.isfinite(loss))
    print("KERNEL_OK")
</pallas_src>

<mosaic_0001>
module attributes {stable_mosaic.version = 11 : i64} {
  func.func @kernel(%arg0: i32, %arg1: memref<8x32xf32, #tpu.memory_space<vmem>>, %arg2: memref<1x1x8xf32, #tpu.memory_space<vmem>>, %arg3: memref<20x128xf32, #tpu.memory_space<vmem>>, %arg4: memref<2x32x96xbf16, #tpu.memory_space<vmem>>, %arg5: memref<2x32x32xbf16, #tpu.memory_space<vmem>>, %arg6: memref<2x32x64xbf16, #tpu.memory_space<vmem>>, %arg7: memref<2x64x32xbf16, #tpu.memory_space<vmem>>, %arg8: memref<32x32xbf16, #tpu.memory_space<vmem>>, %arg9: memref<32x128xbf16, #tpu.memory_space<vmem>>, %arg10: memref<2xi32, #tpu.memory_space<smem>>, %arg11: memref<1x1x128xf32, #tpu.memory_space<vmem>>) attributes {dimension_semantics = [#tpu.dimension_semantics<parallel>], iteration_bounds = array<i64: 2>, scalar_prefetch = 0 : i64, scratch_operands = 0 : i64, tpu.core_type = #tpu.core_type<tc>, window_params = [{transform_indices = @transform_0, window_bounds = array<i64: 8, 32>}, {transform_indices = @transform_1, window_bounds = array<i64: 1, 1, 8>}, {pipeline_mode = #tpu.pipeline_mode<synchronous>, transform_indices = @transform_2, window_bounds = array<i64: 20, 128>}, {pipeline_mode = #tpu.pipeline_mode<synchronous>, transform_indices = @transform_3, window_bounds = array<i64: 2, 32, 96>}, {pipeline_mode = #tpu.pipeline_mode<synchronous>, transform_indices = @transform_4, window_bounds = array<i64: 2, 32, 32>}, {pipeline_mode = #tpu.pipeline_mode<synchronous>, transform_indices = @transform_5, window_bounds = array<i64: 2, 32, 64>}, {pipeline_mode = #tpu.pipeline_mode<synchronous>, transform_indices = @transform_6, window_bounds = array<i64: 2, 64, 32>}, {pipeline_mode = #tpu.pipeline_mode<synchronous>, transform_indices = @transform_7, window_bounds = array<i64: 32, 32>}, {pipeline_mode = #tpu.pipeline_mode<synchronous>, transform_indices = @transform_8, window_bounds = array<i64: 32, 128>}, {transform_indices = @transform_9, window_bounds = array<i64: 2>}, {transform_indices = @transform_10, window_bounds = array<i64: 1, 1, 128>}]} {
    %c0 = arith.constant 0 : index
    %c0_0 = arith.constant 0 : index
    %0 = vector.load %arg3[%c0, %c0_0] : memref<20x128xf32, #tpu.memory_space<vmem>>, vector<20x128xf32>
    %c0_1 = arith.constant 0 : index
    %c0_2 = arith.constant 0 : index
    %1 = vector.load %arg1[%c0_1, %c0_2] : memref<8x32xf32, #tpu.memory_space<vmem>>, vector<8x32xf32>
    %2 = vector.extract_strided_slice %0 {offsets = [0, 0], sizes = [1, 32], strides = [1, 1]} : vector<20x128xf32> to vector<1x32xf32>
    %3 = vector.extract_strided_slice %0 {offsets = [1, 0], sizes = [1, 32], strides = [1, 1]} : vector<20x128xf32> to vector<1x32xf32>
    %cst = arith.constant dense<0.000000e+00> : vector<8xf32>
    %4 = vector.multi_reduction <add>, %1, %cst [1] : vector<8x32xf32> to vector<8xf32>
    %5 = vector.shape_cast %4 : vector<8xf32> to vector<8x1xf32>
    %cst_3 = arith.constant 3.200000e+01 : f32
    %6 = vector.broadcast %cst_3 : f32 to vector<8x1xf32>
    %7 = arith.divf %5, %6 : vector<8x1xf32>
    %8 = vector.broadcast %7 : vector<8x1xf32> to vector<8x32xf32>
    %9 = arith.subf %1, %8 : vector<8x32xf32>
    %10 = arith.mulf %9, %9 : vector<8x32xf32>
    %cst_4 = arith.constant dense<0.000000e+00> : vector<8xf32>
    %11 = vector.multi_reduction <add>, %10, %cst_4 [1] : vector<8x32xf32> to vector<8xf32>
    %12 = vector.shape_cast %11 : vector<8xf32> to vector<8x1xf32>
    %cst_5 = arith.constant 3.200000e+01 : f32
    %13 = vector.broadcast %cst_5 : f32 to vector<8x1xf32>
    %14 = arith.divf %12, %13 : vector<8x1xf32>
    %15 = vector.broadcast %7 : vector<8x1xf32> to vector<8x32xf32>
    %16 = arith.subf %1, %15 : vector<8x32xf32>
    %cst_6 = arith.constant 9.99999996E-13 : f32
    %17 = vector.broadcast %cst_6 : f32 to vector<8x1xf32>
    %18 = arith.addf %14, %17 : vector<8x1xf32>
    %19 = math.rsqrt %18 : vector<8x1xf32>
    %20 = vector.broadcast %19 : vector<8x1xf32> to vector<8x32xf32>
    %21 = arith.mulf %16, %20 : vector<8x32xf32>
    %22 = vector.broadcast %2 : vector<1x32xf32> to vector<8x32xf32>
    %23 = arith.mulf %21, %22 : vector<8x32xf32>
    %24 = vector.broadcast %3 : vector<1x32xf32> to vector<8x32xf32>
    %25 = arith.addf %23, %24 : vector<8x32xf32>
    %c0_7 = arith.constant 0 : index
    %c0_8 = arith.constant 0 : index
    %c0_9 = arith.constant 0 : index
    %26 = vector.load %arg2[%c0_7, %c0_8, %c0_9] : memref<1x1x8xf32, #tpu.memory_space<vmem>>, vector<1x1x8xf32>
    %27 = vector.shape_cast %26 : vector<1x1x8xf32> to vector<1x8xf32>
    %28 = arith.truncf %25 : vector<8x32xf32> to vector<8x32xbf16>
    %c0_10 = arith.constant 0 : index
    %c0_11 = arith.constant 0 : index
    %c0_12 = arith.constant 0 : index
    %29 = vector.load %arg4[%c0_10, %c0_11, %c0_12] : memref<2x32x96xbf16, #tpu.memory_space<vmem>>, vector<1x32x96xbf16>
    %30 = vector.shape_cast %29 : vector<1x32x96xbf16> to vector<32x96xbf16>
    %cst_13 = arith.constant dense<0.000000e+00> : vector<8x96xf32>
    %31 = tpu.matmul %28, %30, %cst_13 {dimension_numbers = #tpu.dot_dimension_numbers<[1], [0], [0], [1], [0, 0, 1, 1], [], []>} : vector<8x32xbf16>, vector<32x96xbf16>, vector<8x96xf32> -> vector<8x96xf32>
    %32 = vector.extract_strided_slice %0 {offsets = [4, 0], sizes = [1, 96], strides = [1, 1]} : vector<20x128xf32> to vector<1x96xf32>
    %33 = vector.broadcast %32 : vector<1x96xf32> to vector<8x96xf32>
    %34 = arith.addf %31, %33 : vector<8x96xf32>
    %35 = vector.extract_strided_slice %34 {offsets = [0, 0], sizes = [8, 32], strides = [1, 1]} : vector<8x96xf32> to vector<8x32xf32>
    %cst_14 = arith.constant 2.500000e-01 : f32
    %36 = vector.broadcast %cst_14 : f32 to vector<8x32xf32>
    %37 = arith.mulf %35, %36 : vector<8x32xf32>
    %38 = arith.truncf %37 : vector<8x32xf32> to vector<8x32xbf16>
    %39 = vector.extract_strided_slice %34 {offsets = [0, 32], sizes = [8, 32], strides = [1, 1]} : vector<8x96xf32> to vector<8x32xf32>
    %40 = arith.truncf %39 : vector<8x32xf32> to vector<8x32xbf16>
    %41 = vector.extract_strided_slice %34 {offsets = [0, 64], sizes = [8, 32], strides = [1, 1]} : vector<8x96xf32> to vector<8x32xf32>
    %42 = arith.truncf %41 : vector<8x32xf32> to vector<8x32xbf16>
    %43 = vector.extract_strided_slice %38 {offsets = [0, 0], sizes = [8, 16], strides = [1, 1]} : vector<8x32xbf16> to vector<8x16xbf16>
    %44 = vector.extract_strided_slice %40 {offsets = [0, 0], sizes = [8, 16], strides = [1, 1]} : vector<8x32xbf16> to vector<8x16xbf16>
    %cst_15 = arith.constant dense<0.000000e+00> : vector<8x8xf32>
    %45 = tpu.matmul %43, %44, %cst_15 {dimension_numbers = #tpu.dot_dimension_numbers<[1], [1], [0], [0], [0, 0, 1, 0], [], []>} : vector<8x16xbf16>, vector<8x16xbf16>, vector<8x8xf32> -> vector<8x8xf32>
    %46 = vector.extract_strided_slice %38 {offsets = [0, 16], sizes = [8, 16], strides = [1, 1]} : vector<8x32xbf16> to vector<8x16xbf16>
    %47 = vector.extract_strided_slice %40 {offsets = [0, 16], sizes = [8, 16], strides = [1, 1]} : vector<8x32xbf16> to vector<8x16xbf16>
    %cst_16 = arith.constant dense<0.000000e+00> : vector<8x8xf32>
    %48 = tpu.matmul %46, %47, %cst_16 {dimension_numbers = #tpu.dot_dimension_numbers<[1], [1], [0], [0], [0, 0, 1, 0], [], []>} : vector<8x16xbf16>, vector<8x16xbf16>, vector<8x8xf32> -> vector<8x8xf32>
    %49 = tpu.concatenate %45, %48 in 0 : vector<8x8xf32>, vector<8x8xf32> -> vector<16x8xf32>
    %50 = vector.broadcast %27 : vector<1x8xf32> to vector<16x8xf32>
    %51 = arith.addf %49, %50 : vector<16x8xf32>
    %cst_17 = arith.constant dense<0xFF800000> : vector<16xf32>
    %52 = vector.multi_reduction <maximumf>, %51, %cst_17 [1] : vector<16x8xf32> to vector<16xf32>
    %53 = vector.shape_cast %52 : vector<16xf32> to vector<16x1xf32>
    %54 = vector.broadcast %53 : vector<16x1xf32> to vector<16x8xf32>
    %55 = arith.subf %51, %54 : vector<16x8xf32>
    %56 = math.exp %55 : vector<16x8xf32>
    %cst_18 = arith.constant dense<0.000000e+00> : vector<16xf32>
    %57 = vector.multi_reduction <add>, %56, %cst_18 [1] : vector<16x8xf32> to vector<16xf32>
    %58 = vector.shape_cast %57 : vector<16xf32> to vector<16x1xf32>
    %59 = tpu.reciprocal %58 {approx = true} : vector<16x1xf32> -> vector<16x1xf32>
    %60 = vector.broadcast %59 : vector<16x1xf32> to vector<16x8xf32>
    %61 = arith.mulf %56, %60 : vector<16x8xf32>
    %62 = arith.truncf %61 : vector<16x8xf32> to vector<16x8xbf16>
    %63 = vector.extract_strided_slice %62 {offsets = [0, 0], sizes = [8, 8], strides = [1, 1]} : vector<16x8xbf16> to vector<8x8xbf16>
    %64 = vector.extract_strided_slice %42 {offsets = [0, 0], sizes = [8, 16], strides = [1, 1]} : vector<8x32xbf16> to vector<8x16xbf16>
    %cst_19 = arith.constant dense<0.000000e+00> : vector<8x16xf32>
    %65 = tpu.matmul %63, %64, %cst_19 {dimension_numbers = #tpu.dot_dimension_numbers<[1], [0], [0], [1], [0, 0, 1, 1], [], []>} : vector<8x8xbf16>, vector<8x16xbf16>, vector<8x16xf32> -> vector<8x16xf32>
    %66 = vector.extract_strided_slice %62 {offsets = [8, 0], sizes = [8, 8], strides = [1, 1]} : vector<16x8xbf16> to vector<8x8xbf16>
    %67 = vector.extract_strided_slice %42 {offsets = [0, 16], sizes = [8, 16], strides = [1, 1]} : vector<8x32xbf16> to vector<8x16xbf16>
    %cst_20 = arith.constant dense<0.000000e+00> : vector<8x16xf32>
    %68 = tpu.matmul %66, %67, %cst_20 {dimension_numbers = #tpu.dot_dimension_numbers<[1], [0], [0], [1], [0, 0, 1, 1], [], []>} : vector<8x8xbf16>, vector<8x16xbf16>, vector<8x16xf32> -> vector<8x16xf32>
    %69 = tpu.concatenate %65, %68 in 1 : vector<8x16xf32>, vector<8x16xf32> -> vector<8x32xf32>
    %70 = arith.truncf %69 : vector<8x32xf32> to vector<8x32xbf16>
    %c0_21 = arith.constant 0 : index
    %c0_22 = arith.constant 0 : index
    %c0_23 = arith.constant 0 : index
    %71 = vector.load %arg5[%c0_21, %c0_22, %c0_23] : memref<2x32x32xbf16, #tpu.memory_space<vmem>>, vector<1x32x32xbf16>
    %72 = vector.shape_cast %71 : vector<1x32x32xbf16> to vector<32x32xbf16>
    %cst_24 = arith.constant dense<0.000000e+00> : vector<8x32xf32>
    %73 = tpu.matmul %70, %72, %cst_24 {dimension_numbers = #tpu.dot_dimension_numbers<[1], [0], [0], [1], [0, 0, 1, 1], [], []>} : vector<8x32xbf16>, vector<32x32xbf16>, vector<8x32xf32> -> vector<8x32xf32>
    %74 = vector.extract_strided_slice %0 {offsets = [5, 0], sizes = [1, 32], strides = [1, 1]} : vector<20x128xf32> to vector<1x32xf32>
    %75 = vector.broadcast %74 : vector<1x32xf32> to vector<8x32xf32>
    %76 = arith.addf %73, %75 : vector<8x32xf32>
    %77 = arith.addf %25, %76 : vector<8x32xf32>
    %78 = vector.extract_strided_slice %0 {offsets = [6, 0], sizes = [1, 32], strides = [1, 1]} : vector<20x128xf32> to vector<1x32xf32>
    %79 = vector.extract_strided_slice %0 {offsets = [7, 0], sizes = [1, 32], strides = [1, 1]} : vector<20x128xf32> to vector<1x32xf32>
    %cst_25 = arith.constant dense<0.000000e+00> : vector<8xf32>
    %80 = vector.multi_reduction <add>, %77, %cst_25 [1] : vector<8x32xf32> to vector<8xf32>
    %81 = vector.shape_cast %80 : vector<8xf32> to vector<8x1xf32>
    %cst_26 = arith.constant 3.200000e+01 : f32
    %82 = vector.broadcast %cst_26 : f32 to vector<8x1xf32>
    %83 = arith.divf %81, %82 : vector<8x1xf32>
    %84 = vector.broadcast %83 : vector<8x1xf32> to vector<8x32xf32>
    %85 = arith.subf %77, %84 : vector<8x32xf32>
    %86 = arith.mulf %85, %85 : vector<8x32xf32>
    %cst_27 = arith.constant dense<0.000000e+00> : vector<8xf32>
    %87 = vector.multi_reduction <add>, %86, %cst_27 [1] : vector<8x32xf32> to vector<8xf32>
    %88 = vector.shape_cast %87 : vector<8xf32> to vector<8x1xf32>
    %cst_28 = arith.constant 3.200000e+01 : f32
    %89 = vector.broadcast %cst_28 : f32 to vector<8x1xf32>
    %90 = arith.divf %88, %89 : vector<8x1xf32>
    %91 = vector.broadcast %83 : vector<8x1xf32> to vector<8x32xf32>
    %92 = arith.subf %77, %91 : vector<8x32xf32>
    %cst_29 = arith.constant 9.99999996E-13 : f32
    %93 = vector.broadcast %cst_29 : f32 to vector<8x1xf32>
    %94 = arith.addf %90, %93 : vector<8x1xf32>
    %95 = math.rsqrt %94 : vector<8x1xf32>
    %96 = vector.broadcast %95 : vector<8x1xf32> to vector<8x32xf32>
    %97 = arith.mulf %92, %96 : vector<8x32xf32>
    %98 = vector.broadcast %78 : vector<1x32xf32> to vector<8x32xf32>
    %99 = arith.mulf %97, %98 : vector<8x32xf32>
    %100 = vector.broadcast %79 : vector<1x32xf32> to vector<8x32xf32>
    %101 = arith.addf %99, %100 : vector<8x32xf32>
    %102 = arith.truncf %101 : vector<8x32xf32> to vector<8x32xbf16>
    %c0_30 = arith.constant 0 : index
    %c0_31 = arith.constant 0 : index
    %c0_32 = arith.constant 0 : index
    %103 = vector.load %arg6[%c0_30, %c0_31, %c0_32] : memref<2x32x64xbf16, #tpu.memory_space<vmem>>, vector<1x32x64xbf16>
    %104 = vector.shape_cast %103 : vector<1x32x64xbf16> to vector<32x64xbf16>
    %cst_33 = arith.constant dense<0.000000e+00> : vector<8x64xf32>
    %105 = tpu.matmul %102, %104, %cst_33 {dimension_numbers = #tpu.dot_dimension_numbers<[1], [0], [0], [1], [0, 0, 1, 1], [], []>} : vector<8x32xbf16>, vector<32x64xbf16>, vector<8x64xf32> -> vector<8x64xf32>
    %106 = vector.extract_strided_slice %0 {offsets = [8, 0], sizes = [1, 64], strides = [1, 1]} : vector<20x128xf32> to vector<1x64xf32>
    %107 = vector.broadcast %106 : vector<1x64xf32> to vector<8x64xf32>
    %108 = arith.addf %105, %107 : vector<8x64xf32>
    %cst_34 = arith.constant 5.000000e-01 : f32
    %109 = vector.broadcast %cst_34 : f32 to vector<8x64xf32>
    %110 = arith.mulf %109, %108 : vector<8x64xf32>
    %cst_35 = arith.constant 4.471500e-02 : f32
    %111 = vector.broadcast %cst_35 : f32 to vector<8x64xf32>
    %112 = arith.mulf %111, %108 : vector<8x64xf32>
    %113 = arith.mulf %112, %108 : vector<8x64xf32>
    %114 = arith.mulf %113, %108 : vector<8x64xf32>
    %115 = arith.addf %108, %114 : vector<8x64xf32>
    %cst_36 = arith.constant 0.797884583 : f32
    %116 = vector.broadcast %cst_36 : f32 to vector<8x64xf32>
    %117 = arith.mulf %116, %115 : vector<8x64xf32>
    %118 = math.tanh %117 : vector<8x64xf32>
    %cst_37 = arith.constant 1.000000e+00 : f32
    %119 = vector.broadcast %cst_37 : f32 to vector<8x64xf32>
    %120 = arith.addf %119, %118 : vector<8x64xf32>
    %121 = arith.mulf %110, %120 : vector<8x64xf32>
    %122 = arith.truncf %121 : vector<8x64xf32> to vector<8x64xbf16>
    %c0_38 = arith.constant 0 : index
    %c0_39 = arith.constant 0 : index
    %c0_40 = arith.constant 0 : index
    %123 = vector.load %arg7[%c0_38, %c0_39, %c0_40] : memref<2x64x32xbf16, #tpu.memory_space<vmem>>, vector<1x64x32xbf16>
    %124 = vector.shape_cast %123 : vector<1x64x32xbf16> to vector<64x32xbf16>
    %cst_41 = arith.constant dense<0.000000e+00> : vector<8x32xf32>
    %125 = tpu.matmul %122, %124, %cst_41 {dimension_numbers = #tpu.dot_dimension_numbers<[1], [0], [0], [1], [0, 0, 1, 1], [], []>} : vector<8x64xbf16>, vector<64x32xbf16>, vector<8x32xf32> -> vector<8x32xf32>
    %126 = vector.extract_strided_slice %0 {offsets = [9, 0], sizes = [1, 32], strides = [1, 1]} : vector<20x128xf32> to vector<1x32xf32>
    %127 = vector.broadcast %126 : vector<1x32xf32> to vector<8x32xf32>
    %128 = arith.addf %125, %127 : vector<8x32xf32>
    %129 = arith.addf %101, %128 : vector<8x32xf32>
    %130 = vector.extract_strided_slice %0 {offsets = [10, 0], sizes = [1, 32], strides = [1, 1]} : vector<20x128xf32> to vector<1x32xf32>
    %131 = vector.extract_strided_slice %0 {offsets = [11, 0], sizes = [1, 32], strides = [1, 1]} : vector<20x128xf32> to vector<1x32xf32>
    %cst_42 = arith.constant dense<0.000000e+00> : vector<8xf32>
    %132 = vector.multi_reduction <add>, %129, %cst_42 [1] : vector<8x32xf32> to vector<8xf32>
    %133 = vector.shape_cast %132 : vector<8xf32> to vector<8x1xf32>
    %cst_43 = arith.constant 3.200000e+01 : f32
    %134 = vector.broadcast %cst_43 : f32 to vector<8x1xf32>
    %135 = arith.divf %133, %134 : vector<8x1xf32>
    %136 = vector.broadcast %135 : vector<8x1xf32> to vector<8x32xf32>
    %137 = arith.subf %129, %136 : vector<8x32xf32>
    %138 = arith.mulf %137, %137 : vector<8x32xf32>
    %cst_44 = arith.constant dense<0.000000e+00> : vector<8xf32>
    %139 = vector.multi_reduction <add>, %138, %cst_44 [1] : vector<8x32xf32> to vector<8xf32>
    %140 = vector.shape_cast %139 : vector<8xf32> to vector<8x1xf32>
    %cst_45 = arith.constant 3.200000e+01 : f32
    %141 = vector.broadcast %cst_45 : f32 to vector<8x1xf32>
    %142 = arith.divf %140, %141 : vector<8x1xf32>
    %143 = vector.broadcast %135 : vector<8x1xf32> to vector<8x32xf32>
    %144 = arith.subf %129, %143 : vector<8x32xf32>
    %cst_46 = arith.constant 9.99999996E-13 : f32
    %145 = vector.broadcast %cst_46 : f32 to vector<8x1xf32>
    %146 = arith.addf %142, %145 : vector<8x1xf32>
    %147 = math.rsqrt %146 : vector<8x1xf32>
    %148 = vector.broadcast %147 : vector<8x1xf32> to vector<8x32xf32>
    %149 = arith.mulf %144, %148 : vector<8x32xf32>
    %150 = vector.broadcast %130 : vector<1x32xf32> to vector<8x32xf32>
    %151 = arith.mulf %149, %150 : vector<8x32xf32>
    %152 = vector.broadcast %131 : vector<1x32xf32> to vector<8x32xf32>
    %153 = arith.addf %151, %152 : vector<8x32xf32>
    %154 = arith.truncf %153 : vector<8x32xf32> to vector<8x32xbf16>
    %c1 = arith.constant 1 : index
    %c0_47 = arith.constant 0 : index
    %c0_48 = arith.constant 0 : index
    %155 = vector.load %arg4[%c1, %c0_47, %c0_48] : memref<2x32x96xbf16, #tpu.memory_space<vmem>>, vector<1x32x96xbf16>
    %156 = vector.shape_cast %155 : vector<1x32x96xbf16> to vector<32x96xbf16>
    %cst_49 = arith.constant dense<0.000000e+00> : vector<8x96xf32>
    %157 = tpu.matmul %154, %156, %cst_49 {dimension_numbers = #tpu.dot_dimension_numbers<[1], [0], [0], [1], [0, 0, 1, 1], [], []>} : vector<8x32xbf16>, vector<32x96xbf16>, vector<8x96xf32> -> vector<8x96xf32>
    %158 = vector.extract_strided_slice %0 {offsets = [12, 0], sizes = [1, 96], strides = [1, 1]} : vector<20x128xf32> to vector<1x96xf32>
    %159 = vector.broadcast %158 : vector<1x96xf32> to vector<8x96xf32>
    %160 = arith.addf %157, %159 : vector<8x96xf32>
    %161 = vector.extract_strided_slice %160 {offsets = [0, 0], sizes = [8, 32], strides = [1, 1]} : vector<8x96xf32> to vector<8x32xf32>
    %cst_50 = arith.constant 2.500000e-01 : f32
    %162 = vector.broadcast %cst_50 : f32 to vector<8x32xf32>
    %163 = arith.mulf %161, %162 : vector<8x32xf32>
    %164 = arith.truncf %163 : vector<8x32xf32> to vector<8x32xbf16>
    %165 = vector.extract_strided_slice %160 {offsets = [0, 32], sizes = [8, 32], strides = [1, 1]} : vector<8x96xf32> to vector<8x32xf32>
    %166 = arith.truncf %165 : vector<8x32xf32> to vector<8x32xbf16>
    %167 = vector.extract_strided_slice %160 {offsets = [0, 64], sizes = [8, 32], strides = [1, 1]} : vector<8x96xf32> to vector<8x32xf32>
    %168 = arith.truncf %167 : vector<8x32xf32> to vector<8x32xbf16>
    %169 = vector.extract_strided_slice %164 {offsets = [0, 0], sizes = [8, 16], strides = [1, 1]} : vector<8x32xbf16> to vector<8x16xbf16>
    %170 = vector.extract_strided_slice %166 {offsets = [0, 0], sizes = [8, 16], strides = [1, 1]} : vector<8x32xbf16> to vector<8x16xbf16>
    %cst_51 = arith.constant dense<0.000000e+00> : vector<8x8xf32>
    %171 = tpu.matmul %169, %170, %cst_51 {dimension_numbers = #tpu.dot_dimension_numbers<[1], [1], [0], [0], [0, 0, 1, 0], [], []>} : vector<8x16xbf16>, vector<8x16xbf16>, vector<8x8xf32> -> vector<8x8xf32>
    %172 = vector.extract_strided_slice %164 {offsets = [0, 16], sizes = [8, 16], strides = [1, 1]} : vector<8x32xbf16> to vector<8x16xbf16>
    %173 = vector.extract_strided_slice %166 {offsets = [0, 16], sizes = [8, 16], strides = [1, 1]} : vector<8x32xbf16> to vector<8x16xbf16>
    %cst_52 = arith.constant dense<0.000000e+00> : vector<8x8xf32>
    %174 = tpu.matmul %172, %173, %cst_52 {dimension_numbers = #tpu.dot_dimension_numbers<[1], [1], [0], [0], [0, 0, 1, 0], [], []>} : vector<8x16xbf16>, vector<8x16xbf16>, vector<8x8xf32> -> vector<8x8xf32>
    %175 = tpu.concatenate %171, %174 in 0 : vector<8x8xf32>, vector<8x8xf32> -> vector<16x8xf32>
    %176 = vector.broadcast %27 : vector<1x8xf32> to vector<16x8xf32>
    %177 = arith.addf %175, %176 : vector<16x8xf32>
    %cst_53 = arith.constant dense<0xFF800000> : vector<16xf32>
    %178 = vector.multi_reduction <maximumf>, %177, %cst_53 [1] : vector<16x8xf32> to vector<16xf32>
    %179 = vector.shape_cast %178 : vector<16xf32> to vector<16x1xf32>
    %180 = vector.broadcast %179 : vector<16x1xf32> to vector<16x8xf32>
    %181 = arith.subf %177, %180 : vector<16x8xf32>
    %182 = math.exp %181 : vector<16x8xf32>
    %cst_54 = arith.constant dense<0.000000e+00> : vector<16xf32>
    %183 = vector.multi_reduction <add>, %182, %cst_54 [1] : vector<16x8xf32> to vector<16xf32>
    %184 = vector.shape_cast %183 : vector<16xf32> to vector<16x1xf32>
    %185 = tpu.reciprocal %184 {approx = true} : vector<16x1xf32> -> vector<16x1xf32>
    %186 = vector.broadcast %185 : vector<16x1xf32> to vector<16x8xf32>
    %187 = arith.mulf %182, %186 : vector<16x8xf32>
    %188 = arith.truncf %187 : vector<16x8xf32> to vector<16x8xbf16>
    %189 = vector.extract_strided_slice %188 {offsets = [0, 0], sizes = [8, 8], strides = [1, 1]} : vector<16x8xbf16> to vector<8x8xbf16>
    %190 = vector.extract_strided_slice %168 {offsets = [0, 0], sizes = [8, 16], strides = [1, 1]} : vector<8x32xbf16> to vector<8x16xbf16>
    %cst_55 = arith.constant dense<0.000000e+00> : vector<8x16xf32>
    %191 = tpu.matmul %189, %190, %cst_55 {dimension_numbers = #tpu.dot_dimension_numbers<[1], [0], [0], [1], [0, 0, 1, 1], [], []>} : vector<8x8xbf16>, vector<8x16xbf16>, vector<8x16xf32> -> vector<8x16xf32>
    %192 = vector.extract_strided_slice %188 {offsets = [8, 0], sizes = [8, 8], strides = [1, 1]} : vector<16x8xbf16> to vector<8x8xbf16>
    %193 = vector.extract_strided_slice %168 {offsets = [0, 16], sizes = [8, 16], strides = [1, 1]} : vector<8x32xbf16> to vector<8x16xbf16>
    %cst_56 = arith.constant dense<0.000000e+00> : vector<8x16xf32>
    %194 = tpu.matmul %192, %193, %cst_56 {dimension_numbers = #tpu.dot_dimension_numbers<[1], [0], [0], [1], [0, 0, 1, 1], [], []>} : vector<8x8xbf16>, vector<8x16xbf16>, vector<8x16xf32> -> vector<8x16xf32>
    %195 = tpu.concatenate %191, %194 in 1 : vector<8x16xf32>, vector<8x16xf32> -> vector<8x32xf32>
    %196 = arith.truncf %195 : vector<8x32xf32> to vector<8x32xbf16>
    %c1_57 = arith.constant 1 : index
    %c0_58 = arith.constant 0 : index
    %c0_59 = arith.constant 0 : index
    %197 = vector.load %arg5[%c1_57, %c0_58, %c0_59] : memref<2x32x32xbf16, #tpu.memory_space<vmem>>, vector<1x32x32xbf16>
    %198 = vector.shape_cast %197 : vector<1x32x32xbf16> to vector<32x32xbf16>
    %cst_60 = arith.constant dense<0.000000e+00> : vector<8x32xf32>
    %199 = tpu.matmul %196, %198, %cst_60 {dimension_numbers = #tpu.dot_dimension_numbers<[1], [0], [0], [1], [0, 0, 1, 1], [], []>} : vector<8x32xbf16>, vector<32x32xbf16>, vector<8x32xf32> -> vector<8x32xf32>
    %200 = vector.extract_strided_slice %0 {offsets = [13, 0], sizes = [1, 32], strides = [1, 1]} : vector<20x128xf32> to vector<1x32xf32>
    %201 = vector.broadcast %200 : vector<1x32xf32> to vector<8x32xf32>
    %202 = arith.addf %199, %201 : vector<8x32xf32>
    %203 = arith.addf %153, %202 : vector<8x32xf32>
    %204 = vector.extract_strided_slice %0 {offsets = [14, 0], sizes = [1, 32], strides = [1, 1]} : vector<20x128xf32> to vector<1x32xf32>
    %205 = vector.extract_strided_slice %0 {offsets = [15, 0], sizes = [1, 32], strides = [1, 1]} : vector<20x128xf32> to vector<1x32xf32>
    %cst_61 = arith.constant dense<0.000000e+00> : vector<8xf32>
    %206 = vector.multi_reduction <add>, %203, %cst_61 [1] : vector<8x32xf32> to vector<8xf32>
    %207 = vector.shape_cast %206 : vector<8xf32> to vector<8x1xf32>
    %cst_62 = arith.constant 3.200000e+01 : f32
    %208 = vector.broadcast %cst_62 : f32 to vector<8x1xf32>
    %209 = arith.divf %207, %208 : vector<8x1xf32>
    %210 = vector.broadcast %209 : vector<8x1xf32> to vector<8x32xf32>
    %211 = arith.subf %203, %210 : vector<8x32xf32>
    %212 = arith.mulf %211, %211 : vector<8x32xf32>
    %cst_63 = arith.constant dense<0.000000e+00> : vector<8xf32>
    %213 = vector.multi_reduction <add>, %212, %cst_63 [1] : vector<8x32xf32> to vector<8xf32>
    %214 = vector.shape_cast %213 : vector<8xf32> to vector<8x1xf32>
    %cst_64 = arith.constant 3.200000e+01 : f32
    %215 = vector.broadcast %cst_64 : f32 to vector<8x1xf32>
    %216 = arith.divf %214, %215 : vector<8x1xf32>
    %217 = vector.broadcast %209 : vector<8x1xf32> to vector<8x32xf32>
    %218 = arith.subf %203, %217 : vector<8x32xf32>
    %cst_65 = arith.constant 9.99999996E-13 : f32
    %219 = vector.broadcast %cst_65 : f32 to vector<8x1xf32>
    %220 = arith.addf %216, %219 : vector<8x1xf32>
    %221 = math.rsqrt %220 : vector<8x1xf32>
    %222 = vector.broadcast %221 : vector<8x1xf32> to vector<8x32xf32>
    %223 = arith.mulf %218, %222 : vector<8x32xf32>
    %224 = vector.broadcast %204 : vector<1x32xf32> to vector<8x32xf32>
    %225 = arith.mulf %223, %224 : vector<8x32xf32>
    %226 = vector.broadcast %205 : vector<1x32xf32> to vector<8x32xf32>
    %227 = arith.addf %225, %226 : vector<8x32xf32>
    %228 = arith.truncf %227 : vector<8x32xf32> to vector<8x32xbf16>
    %c1_66 = arith.constant 1 : index
    %c0_67 = arith.constant 0 : index
    %c0_68 = arith.constant 0 : index
    %229 = vector.load %arg6[%c1_66, %c0_67, %c0_68] : memref<2x32x64xbf16, #tpu.memory_space<vmem>>, vector<1x32x64xbf16>
    %230 = vector.shape_cast %229 : vector<1x32x64xbf16> to vector<32x64xbf16>
    %cst_69 = arith.constant dense<0.000000e+00> : vector<8x64xf32>
    %231 = tpu.matmul %228, %230, %cst_69 {dimension_numbers = #tpu.dot_dimension_numbers<[1], [0], [0], [1], [0, 0, 1, 1], [], []>} : vector<8x32xbf16>, vector<32x64xbf16>, vector<8x64xf32> -> vector<8x64xf32>
    %232 = vector.extract_strided_slice %0 {offsets = [16, 0], sizes = [1, 64], strides = [1, 1]} : vector<20x128xf32> to vector<1x64xf32>
    %233 = vector.broadcast %232 : vector<1x64xf32> to vector<8x64xf32>
    %234 = arith.addf %231, %233 : vector<8x64xf32>
    %cst_70 = arith.constant 5.000000e-01 : f32
    %235 = vector.broadcast %cst_70 : f32 to vector<8x64xf32>
    %236 = arith.mulf %235, %234 : vector<8x64xf32>
    %cst_71 = arith.constant 4.471500e-02 : f32
    %237 = vector.broadcast %cst_71 : f32 to vector<8x64xf32>
    %238 = arith.mulf %237, %234 : vector<8x64xf32>
    %239 = arith.mulf %238, %234 : vector<8x64xf32>
    %240 = arith.mulf %239, %234 : vector<8x64xf32>
    %241 = arith.addf %234, %240 : vector<8x64xf32>
    %cst_72 = arith.constant 0.797884583 : f32
    %242 = vector.broadcast %cst_72 : f32 to vector<8x64xf32>
    %243 = arith.mulf %242, %241 : vector<8x64xf32>
    %244 = math.tanh %243 : vector<8x64xf32>
    %cst_73 = arith.constant 1.000000e+00 : f32
    %245 = vector.broadcast %cst_73 : f32 to vector<8x64xf32>
    %246 = arith.addf %245, %244 : vector<8x64xf32>
    %247 = arith.mulf %236, %246 : vector<8x64xf32>
    %248 = arith.truncf %247 : vector<8x64xf32> to vector<8x64xbf16>
    %c1_74 = arith.constant 1 : index
    %c0_75 = arith.constant 0 : index
    %c0_76 = arith.constant 0 : index
    %249 = vector.load %arg7[%c1_74, %c0_75, %c0_76] : memref<2x64x32xbf16, #tpu.memory_space<vmem>>, vector<1x64x32xbf16>
    %250 = vector.shape_cast %249 : vector<1x64x32xbf16> to vector<64x32xbf16>
    %cst_77 = arith.constant dense<0.000000e+00> : vector<8x32xf32>
    %251 = tpu.matmul %248, %250, %cst_77 {dimension_numbers = #tpu.dot_dimension_numbers<[1], [0], [0], [1], [0, 0, 1, 1], [], []>} : vector<8x64xbf16>, vector<64x32xbf16>, vector<8x32xf32> -> vector<8x32xf32>
    %252 = vector.extract_strided_slice %0 {offsets = [17, 0], sizes = [1, 32], strides = [1, 1]} : vector<20x128xf32> to vector<1x32xf32>
    %253 = vector.broadcast %252 : vector<1x32xf32> to vector<8x32xf32>
    %254 = arith.addf %251, %253 : vector<8x32xf32>
    %255 = arith.addf %227, %254 : vector<8x32xf32>
    %256 = vector.extract_strided_slice %0 {offsets = [18, 0], sizes = [1, 32], strides = [1, 1]} : vector<20x128xf32> to vector<1x32xf32>
    %257 = vector.extract_strided_slice %0 {offsets = [19, 0], sizes = [1, 32], strides = [1, 1]} : vector<20x128xf32> to vector<1x32xf32>
    %cst_78 = arith.constant dense<0.000000e+00> : vector<8xf32>
    %258 = vector.multi_reduction <add>, %255, %cst_78 [1] : vector<8x32xf32> to vector<8xf32>
    %259 = vector.shape_cast %258 : vector<8xf32> to vector<8x1xf32>
    %cst_79 = arith.constant 3.200000e+01 : f32
    %260 = vector.broadcast %cst_79 : f32 to vector<8x1xf32>
    %261 = arith.divf %259, %260 : vector<8x1xf32>
    %262 = vector.broadcast %261 : vector<8x1xf32> to vector<8x32xf32>
    %263 = arith.subf %255, %262 : vector<8x32xf32>
    %264 = arith.mulf %263, %263 : vector<8x32xf32>
    %cst_80 = arith.constant dense<0.000000e+00> : vector<8xf32>
    %265 = vector.multi_reduction <add>, %264, %cst_80 [1] : vector<8x32xf32> to vector<8xf32>
    %266 = vector.shape_cast %265 : vector<8xf32> to vector<8x1xf32>
    %cst_81 = arith.constant 3.200000e+01 : f32
    %267 = vector.broadcast %cst_81 : f32 to vector<8x1xf32>
    %268 = arith.divf %266, %267 : vector<8x1xf32>
    %269 = vector.broadcast %261 : vector<8x1xf32> to vector<8x32xf32>
    %270 = arith.subf %255, %269 : vector<8x32xf32>
    %cst_82 = arith.constant 9.99999996E-13 : f32
    %271 = vector.broadcast %cst_82 : f32 to vector<8x1xf32>
    %272 = arith.addf %268, %271 : vector<8x1xf32>
    %273 = math.rsqrt %272 : vector<8x1xf32>
    %274 = vector.broadcast %273 : vector<8x1xf32> to vector<8x32xf32>
    %275 = arith.mulf %270, %274 : vector<8x32xf32>
    %276 = vector.broadcast %256 : vector<1x32xf32> to vector<8x32xf32>
    %277 = arith.mulf %275, %276 : vector<8x32xf32>
    %278 = vector.broadcast %257 : vector<1x32xf32> to vector<8x32xf32>
    %279 = arith.addf %277, %278 : vector<8x32xf32>
    %280 = vector.extract_strided_slice %279 {offsets = [0, 0], sizes = [1, 32], strides = [1, 1]} : vector<8x32xf32> to vector<1x32xf32>
    %281 = arith.truncf %280 : vector<1x32xf32> to vector<1x32xbf16>
    %c0_83 = arith.constant 0 : index
    %c0_84 = arith.constant 0 : index
    %282 = vector.load %arg8[%c0_83, %c0_84] : memref<32x32xbf16, #tpu.memory_space<vmem>>, vector<32x32xbf16>
    %cst_85 = arith.constant dense<0.000000e+00> : vector<1x32xf32>
    %283 = tpu.matmul %281, %282, %cst_85 {dimension_numbers = #tpu.dot_dimension_numbers<[1], [0], [0], [1], [0, 0, 1, 1], [], []>} : vector<1x32xbf16>, vector<32x32xbf16>, vector<1x32xf32> -> vector<1x32xf32>
    %284 = vector.extract_strided_slice %0 {offsets = [2, 0], sizes = [1, 32], strides = [1, 1]} : vector<20x128xf32> to vector<1x32xf32>
    %285 = arith.addf %283, %284 : vector<1x32xf32>
    %286 = math.tanh %285 : vector<1x32xf32>
    %287 = arith.truncf %286 : vector<1x32xf32> to vector<1x32xbf16>
    %c0_86 = arith.constant 0 : index
    %c0_87 = arith.constant 0 : index
    %288 = vector.load %arg9[%c0_86, %c0_87] : memref<32x128xbf16, #tpu.memory_space<vmem>>, vector<32x128xbf16>
    %cst_88 = arith.constant dense<0.000000e+00> : vector<1x128xf32>
    %289 = tpu.matmul %287, %288, %cst_88 {dimension_numbers = #tpu.dot_dimension_numbers<[1], [0], [0], [1], [0, 0, 1, 1], [], []>} : vector<1x32xbf16>, vector<32x128xbf16>, vector<1x128xf32> -> vector<1x128xf32>
    %290 = vector.extract_strided_slice %0 {offsets = [3, 0], sizes = [1, 128], strides = [1, 1]} : vector<20x128xf32> to vector<1x128xf32>
    %291 = arith.addf %289, %290 : vector<1x128xf32>
    %292 = tpu.iota {dimensions = array<i32: 1>} : vector<1x128xi32>
    %c2_i32 = arith.constant 2 : i32
    %293 = vector.broadcast %c2_i32 : i32 to vector<1x128xi32>
    %294 = arith.cmpi slt, %292, %293 : vector<1x128xi32>
    %cst_89 = arith.constant -1.000000e+30 : f32
    %295 = vector.broadcast %cst_89 : f32 to vector<1x128xf32>
    %296 = arith.select %294, %291, %295 : vector<1x128xi1>, vector<1x128xf32>
    %cst_90 = arith.constant dense<0xFF800000> : vector<1xf32>
    %297 = vector.multi_reduction <maximumf>, %296, %cst_90 [1] : vector<1x128xf32> to vector<1xf32>
    %298 = vector.shape_cast %297 : vector<1xf32> to vector<1x1xf32>
    %299 = vector.broadcast %298 : vector<1x1xf32> to vector<1x128xf32>
    %300 = arith.subf %296, %299 : vector<1x128xf32>
    %301 = math.exp %300 : vector<1x128xf32>
    %cst_91 = arith.constant 0.000000e+00 : f32
    %302 = vector.broadcast %cst_91 : f32 to vector<1x128xf32>
    %303 = arith.select %294, %301, %302 : vector<1x128xi1>, vector<1x128xf32>
    %cst_92 = arith.constant dense<0.000000e+00> : vector<1xf32>
    %304 = vector.multi_reduction <add>, %303, %cst_92 [1] : vector<1x128xf32> to vector<1xf32>
    %305 = vector.shape_cast %304 : vector<1xf32> to vector<1x1xf32>
    %306 = math.log %305 : vector<1x1xf32>
    %307 = vector.broadcast %306 : vector<1x1xf32> to vector<1x128xf32>
    %308 = arith.subf %300, %307 : vector<1x128xf32>
    %309 = arith.index_cast %arg0 : i32 to index
    %310 = memref.load %arg10[%309] : memref<2xi32, #tpu.memory_space<smem>>
    %311 = vector.broadcast %310 : i32 to vector<1x128xi32>
    %312 = arith.cmpi eq, %292, %311 : vector<1x128xi32>
    %cst_93 = arith.constant 0.000000e+00 : f32
    %313 = vector.broadcast %cst_93 : f32 to vector<1x128xf32>
    %314 = arith.select %312, %308, %313 : vector<1x128xi1>, vector<1x128xf32>
    %cst_94 = arith.constant dense<0.000000e+00> : vector<1xf32>
    %315 = vector.multi_reduction <add>, %314, %cst_94 [1] : vector<1x128xf32> to vector<1xf32>
    %316 = vector.shape_cast %315 : vector<1xf32> to vector<1x1xf32>
    %cst_95 = arith.constant 0.000000e+00 : f32
    %317 = vector.broadcast %cst_95 : f32 to vector<1x1xf32>
    %318 = arith.subf %317, %316 : vector<1x1xf32>
    %cst_96 = arith.constant 0.000000e+00 : f32
    %319 = vector.broadcast %cst_96 : f32 to vector<1x128xf32>
    %320 = arith.select %294, %291, %319 : vector<1x128xi1>, vector<1x128xf32>
    %c127_i32 = arith.constant 127 : i32
    %321 = vector.broadcast %c127_i32 : i32 to vector<1x128xi32>
    %322 = arith.cmpi eq, %292, %321 : vector<1x128xi32>
    %323 = vector.shape_cast %318 : vector<1x1xf32> to vector<1x1xf32>
    %324 = vector.broadcast %323 : vector<1x1xf32> to vector<1x128xf32>
    %325 = arith.select %322, %324, %320 : vector<1x128xi1>, vector<1x128xf32>
    %c0_97 = arith.constant 0 : index
    %c0_98 = arith.constant 0 : index
    %c0_99 = arith.constant 0 : index
    %326 = vector.load %arg11[%c0_97, %c0_98, %c0_99] : memref<1x1x128xf32, #tpu.memory_space<vmem>>, vector<1x1x128xf32>
    %327 = vector.shape_cast %326 : vector<1x1x128xf32> to vector<1x128xf32>
    %328 = vector.shape_cast %325 : vector<1x128xf32> to vector<1x1x128xf32>
    tpu.vector_store %arg11[%c0_97, %c0_98, %c0_99], %328 {strides = array<i32>} : memref<1x1x128xf32, #tpu.memory_space<vmem>>, vector<1x1x128xf32>,
    return
  }
  func.func @transform_0(%arg0: i32) -> (i32, i32) {
    %c0_i32 = arith.constant 0 : i32
    %c0_i32_0 = arith.constant 0 : i32
    return %arg0, %c0_i32 : i32, i32
  }
  func.func @transform_1(%arg0: i32) -> (i32, i32, i32) {
    %c0_i32 = arith.constant 0 : i32
    %c0_i32_0 = arith.constant 0 : i32
    %c0_i32_1 = arith.constant 0 : i32
    return %arg0, %c0_i32, %c0_i32_0 : i32, i32, i32
  }
  func.func @transform_2(%arg0: i32) -> (i32, i32) {
    %c0_i32 = arith.constant 0 : i32
    %c0_i32_0 = arith.constant 0 : i32
    %c0_i32_1 = arith.constant 0 : i32
    return %c0_i32, %c0_i32_0 : i32, i32
  }
  func.func @transform_3(%arg0: i32) -> (i32, i32, i32) {
    %c0_i32 = arith.constant 0 : i32
    %c0_i32_0 = arith.constant 0 : i32
    %c0_i32_1 = arith.constant 0 : i32
    %c0_i32_2 = arith.constant 0 : i32
    return %c0_i32, %c0_i32_0, %c0_i32_1 : i32, i32, i32
  }
  func.func @transform_4(%arg0: i32) -> (i32, i32, i32) {
    %c0_i32 = arith.constant 0 : i32
    %c0_i32_0 = arith.constant 0 : i32
    %c0_i32_1 = arith.constant 0 : i32
    %c0_i32_2 = arith.constant 0 : i32
    return %c0_i32, %c0_i32_0, %c0_i32_1 : i32, i32, i32
  }
  func.func @transform_5(%arg0: i32) -> (i32, i32, i32) {
    %c0_i32 = arith.constant 0 : i32
    %c0_i32_0 = arith.constant 0 : i32
    %c0_i32_1 = arith.constant 0 : i32
    %c0_i32_2 = arith.constant 0 : i32
    return %c0_i32, %c0_i32_0, %c0_i32_1 : i32, i32, i32
  }
  func.func @transform_6(%arg0: i32) -> (i32, i32, i32) {
    %c0_i32 = arith.constant 0 : i32
    %c0_i32_0 = arith.constant 0 : i32
    %c0_i32_1 = arith.constant 0 : i32
    %c0_i32_2 = arith.constant 0 : i32
    return %c0_i32, %c0_i32_0, %c0_i32_1 : i32, i32, i32
  }
  func.func @transform_7(%arg0: i32) -> (i32, i32) {
    %c0_i32 = arith.constant 0 : i32
    %c0_i32_0 = arith.constant 0 : i32
    %c0_i32_1 = arith.constant 0 : i32
    return %c0_i32, %c0_i32_0 : i32, i32
  }
  func.func @transform_8(%arg0: i32) -> (i32, i32) {
    %c0_i32 = arith.constant 0 : i32
    %c0_i32_0 = arith.constant 0 : i32
    %c0_i32_1 = arith.constant 0 : i32
    return %c0_i32, %c0_i32_0 : i32, i32
  }
  func.func @transform_9(%arg0: i32) -> i32 {
    %c0_i32 = arith.constant 0 : i32
    %c0_i32_0 = arith.constant 0 : i32
    return %c0_i32 : i32
  }
  func.func @transform_10(%arg0: i32) -> (i32, i32, i32) {
    %c0_i32 = arith.constant 0 : i32
    %c0_i32_0 = arith.constant 0 : i32
    %c0_i32_1 = arith.constant 0 : i32
    return %arg0, %c0_i32, %c0_i32_0 : i32, i32, i32
  }
}

</mosaic_0001>

<bundles_post_ra>
// kernel: run.1
= control target key start
LH: loop header
LB: loop body
LE: loop exit
PB: predicated region body
PF: predicated region fallthrough
CT: control target
= control target key end

     0   :  { %15 = vsyncpa [#allocation3], 0  ;;  %s1607_s13 = smov 0   ;;  %s1834_s0 = inlined_call_operand.vmem [shape: f32[16,32], index: 0, kind: input, shape index: {}]   ;;  %s1835_s1 = inlined_call_operand.vmem [shape: f32[2,1,8], index: 1, kind: input, shape index: {}]   ;;  %s1836_s2 = inlined_call_operand.vmem [shape: f32[20,128], index: 2, kind: input, shape index: {}]   ;;  %s1837_s3 = inlined_call_operand.vmem [shape: bf16[2,32,96], index: 3, kind: input, shape index: {}]   ;;  %s1838_s4 = inlined_call_operand.vmem [shape: bf16[2,32,32], index: 4, kind: input, shape index: {}]   ;;  %s1839_s5 = inlined_call_operand.vmem [shape: bf16[2,32,64], index: 5, kind: input, shape index: {}]   ;;  %s1840_s6 = inlined_call_operand.vmem [shape: bf16[2,64,32], index: 6, kind: input, shape index: {}]   ;;  %s1841_s7 = inlined_call_operand.vmem [shape: bf16[32,32], index: 7, kind: input, shape index: {}]   ;;  %s1842_s8 = inlined_call_operand.vmem [shape: bf16[32,128], index: 8, kind: input, shape index: {}]   ;;  %s1843_s9 = inlined_call_operand.vmem [shape: s32[2], index: 9, kind: input, shape index: {}]   ;;  %s1844_s10 = inlined_call_operand.vmem [shape: f32[2,1,128], index: 10, kind: output, shape index: {}]  }
   0x1 LB: > { %s1613_s14 = sadd.s32 4294967295, %s1542_s13   ;;  %p1286_p0 = scmp.ge.s32.totalorder %s1542_s13, 1  ;;  %s1542_s13 = sphi %s1607_s13, %s21_s13  }
   0x2   : > { %p272_p1 = scmp.lt.s32.totalorder %s1542_s13, 3  ;;  %s305_s17 = sshll.u32 %s1843_s9, 4  ;;  %s306_s17 = int_to_ptr.vmem [resolvable:$true] %s305_s17 }
   0x3   : > { %p1460_p3 = scmp.eq.s32.totalorder %s1613_s14, 0  ;;  %s1544_s18 = smov [#allocation2]  }
   0x4   : > { %p273_p2 = pnand %p1286_p0, %p272_p1 }
   0x6   : > { %p1456_p4 = pneg %p273_p2  ;;  %331 = sbr.rel (%p273_p2) target bundleno = 4660 (0x1234), region = 60 }
   0x8   : > { %p1457_p5 = pnand %p1460_p3, %p1456_p4 }
   0xa   : > { %1459 = dma.vmem_to_smem (!%p1457_p5), %s306_s17, 16, %s1544_s18, [#allocation3]  }
   0xb   : > { %1537 = dma.done.wait (%p1460_p3), [#allocation3], 16  }
   0xc   : > { %1539 = vsyncadd (%p1460_p3), [#allocation3], 4294967280 }
   0xd   : > { %338 = sfence }
   0xe   : > { %p371_p6 = scmp.lt.s32.totalorder %s1613_s14, 1  ;;  %vm386_vm0 = vcmask 261120   ;;  %v1545_v2 = vmov 32.0   ;;  %v1429_v14 = vld [vmem:[%s1837_s3 + $0x8] sm:$0xff]  ;;  %v1428_v15 = vld [vmem:[%s1837_s3] sm:$0xff]  ;;  %s1546_s30 = smov 96  }
   0xf   : > { %1479 = vrcp.f32 %v1545_v2  ;;  %448 = vmatpush.bf16.msra.mxu0 %v1429_v14  ;;  %v1644_v24 = vld [vmem:[%s1836_s2] sm:$0xff]  ;;  %s1547_s11 = smov 112   ;;  %s1548_s17 = smov 80   ;;  %vm463_vm5 = vcmask 130048   ;;  %vm514_vm6 = vcmask 64512   ;;  %vm544_vm7 = vcmask 1043456  }
  0x10   : > { %s1623_s19 = scalar_select %p371_p6, %s1613_s14, 1  ;;  %v416_v26 = vperm.slane %v1644_v24, 0  ;;  %v418_v29 = vperm.slane %v1644_v24, 1  ;;  %v426_v33 = vperm.slane %v1644_v24, 4  ;;  %vm725_vm11 = vcmask 523264  }
  0x11   : > { %s1549_s18 = smov 48   ;;  %s1204_s25 = sld [smem:[#allocation2 + %s1613_s14]] }
  0x12   : > { %s1291_s20 = sshll.u32 %s1623_s19, 3  ;;  %s377_s16 = scalar_lea.vmem %s1835_s1, %s1623_s19 }
  0x13   : > { %s374_s23 = scalar_lea.vmem %s1834_s0, %s1291_s20  ;;  %449 = vmatpush.bf16.msra.mxu0 %v1428_v15  ;;  %v1665_v49 = vld [vmem:[%s377_s16] ss:$0 sm:$0xff]  ;;  %s1550_s20 = smov 64  }
  0x14   : > { %v385_v0 = vld [vmem:[%s374_s23] sm:$0xff]  ;;  %s1551_s23 = smov 16   ;;  %s380_s28 = scalar_lea.vmem %s1844_s10, %s1623_s19 }
  0x15   : > { %v387_v1 = vsel %vm386_vm0, %v385_v0, 0.0  ;;  %v1480_v3 = vpop.eup %1479 }
  0x16   : > { %388 = vadd.xlane.f32.xlu0 %v387_v1  ;;  %v391_v4 = vmul.f32 32.0, %v1480_v3  ;;  %vm395_vm1 = vweird.f32 %v1480_v3 }
  0x18   : > { %v392_v5 = vsub.f32 1.0, %v391_v4 }
  0x1a   : > { %v393_v6 = vmul.f32 %v1480_v3, %v392_v5 }
  0x1c   : > { %v394_v7 = vadd.f32 %v1480_v3, %v393_v6 }
  0x1e   : > { %v1630_v8 = vsel %vm395_vm1, %v1480_v3, %v394_v7 }
  0x89   : > { %v389_v9 = vpop.xlane.xlu0 %388 }
  0x8a   : > { %v397_v10 = vmul.f32 %v1630_v8, %v389_v9 }
  0x8c   : > { %v398_v11 = vsub.f32 %v385_v0, %v397_v10 }
  0x8e   : > { %v399_v12 = vmul.f32 %v398_v11, %v398_v11 }
  0x90   : > { %v400_v13 = vsel %vm386_vm0, %v399_v12, 0.0 }
  0x91   : > { %401 = vadd.xlane.f32.xlu0 %v400_v13 }
 0x104   : > { %v402_v16 = vpop.xlane.xlu0 %401 }
 0x105   : > { %v403_v17 = vmul.f32 %v402_v16, %v1630_v8 }
 0x107   : > { %v404_v18 = vadd.f32 1e-12, %v403_v17  ;;  %v1431_v17 = vld [vmem:[%s1838_s4 + $0x8] sm:$0xff] }
 0x108   : > { %614 = vmatpush.bf16.msrb.mxu0 %v1431_v17 }
 0x109   : > { %1481 = vrsqrt.f32 %v404_v18  ;;  %vm411_vm3 = vweird.f32 %v404_v18 }
 0x10f   : > { %v1482_v19 = vpop.eup %1481 }
 0x110   : > { %v406_v20 = vmul.f32 %v1482_v19, %v404_v18  ;;  %vm412_vm2 = vweird.f32 %v1482_v19 }
 0x111   : > { %vm413_vm4 = vmor %vm411_vm3, %vm412_vm2 }
 0x112   : > { %v407_v21 = vmul.f32 %v1482_v19, %v406_v20 }
 0x114   : > { %v408_v22 = vmul.f32 0.5, %v407_v21 }
 0x116   : > { %v409_v23 = vsub.f32 1.5, %v408_v22  ;;  %v1430_v22 = vld [vmem:[%s1838_s4] sm:$0xff] }
 0x117   : > { %615 = vmatpush.bf16.msrb.mxu0 %v1430_v22 }
 0x118   : > { %v410_v25 = vmul.f32 %v1482_v19, %v409_v23 }
 0x11a   : > { %v414_v27 = vsel %vm413_vm4, %v1482_v19, %v410_v25 }
 0x11b   : > { %v415_v28 = vmul.f32 %v414_v27, %v398_v11  ;;  %v592_v27 = vperm.slane %v1644_v24, 5 }
 0x11d   : > { %v417_v30 = vmul.f32 %v416_v26, %v415_v28 }
 0x11f   : > { %v1648_v31 = vadd.f32 %v418_v29, %v417_v30 }
 0x121   : > { %v421_v32 = vpack.c.bf16 %v1648_v31, %v1648_v31 }
 0x123   : > { %1300 = vmatmul.msk.bf16.vlgmr.msra.gmra.mxu0 %vm386_vm0, %v421_v32 }
 0x1a0   : > { %v451_v34 = vpop.f32.mrf.mxu0 }
 0x1a1   : > { %v452_v35 = vadd.f32 %v451_v34, %v426_v33 }
 0x1a3   : > { %v455_v36 = vmul.f32 0.25, %v452_v35  ;;  %v457_v37 = vpack.c.bf16 %v452_v35, %v452_v35 }
 0x1a5   : > { %v456_v38 = vpack.c.bf16 %v455_v36, %v455_v36  ;;  %v459_v39 = vunpack.c.l.b16 %v457_v37 }
 0x1a7   : > { %v460_v40 = vpack.c.b16 %v459_v39, %v459_v39  ;;  %v484_v41 = vunpack.c.l.b16 %v456_v38  ;;  %v1433_v39 = vld [vmem:[%s1839_s5 + $0x8] sm:$0xff] }
 0x1a8   : > { %v453_v42 = vpop.f32.mrf.mxu0 }
 0x1a9   : > { %461 = vrot.lane.b32.xlu1 %v460_v40, %s1546_s30  ;;  %v485_v43 = vpack.c.b16 %v484_v41, %v484_v41 }
 0x1ab   : > { %486 = vrot.lane.b32.xlu2 %v485_v43, %s1547_s11 }
 0x1b1   : > { %488 = vrot.lane.b32.xlu1 %v460_v40, %s1548_s17 }
 0x205   : > { %v487_v48 = vpop.permute.xlu2 %486 }
 0x21b   : > { %v462_v44 = vpop.permute.xlu1 %461 }
 0x21c   : > { %v468_v45 = vsel %vm463_vm5, %v462_v44, 0 }
 0x21d   : > { %477 = vmatpush.bf16.xpose.msra.mxu1 %v468_v45 }
 0x223   : > { %v489_v46 = vpop.permute.xlu1 %488 }
 0x224   : > { %1301 = vmatmul.msk.bf16.vlgmr.msra.gmra.mxu1 %vm463_vm5, %v456_v38  ;;  %v494_v47 = vsel %vm463_vm5, %v489_v46, 0 }
 0x225   : > { %503 = vmatpush.bf16.xpose.msra.mxu2 %v494_v47  ;;  %675 = vmatpush.bf16.msrb.mxu1 %v1433_v39 }
 0x22c   : > { %1302 = vmatmul.msk.bf16.vlgmr.msra.gmra.mxu2 %vm463_vm5, %v487_v48 }
 0x2a1   : > { %v479_v50 = vpop.f32.mrf.mxu1 }
 0x2a2   : > { %v512_v51 = vadd.f32 %v1665_v49, %v479_v50  ;;  %v644_v50 = vperm.slane %v1644_v24, 6 }
 0x2a4   : > { %v515_v52 = vsel %vm514_vm6, %v512_v51, -inf }
 0x2a5   : > { %516 = vmax.xlane.f32.xlu2 %v515_v52 }
 0x2a9   : > { %v481_v53 = vpop.f32.mrf.mxu1 }
 0x2aa   : > { %v646_v53 = vperm.slane %v1644_v24, 7 }
 0x2af   : > { %v505_v54 = vpop.f32.mrf.mxu2 }
 0x2b0   : > { %v513_v55 = vadd.f32 %v1665_v49, %v505_v54 }
 0x2b2   : > { %v518_v56 = vsel %vm514_vm6, %v513_v55, -inf }
 0x2b3   : > { %519 = vmax.xlane.f32.xlu0 %v518_v56 }
 0x2b7   : > { %v507_v57 = vpop.f32.mrf.mxu2 }
 0x2b8   : > { %v1437_v57 = vld [vmem:[%s1840_s6 + $0x18] sm:$0xff] }
 0x2b9   : > { %733 = vmatpush.bf16.msrb.mxu2 %v1437_v57 }
 0x2bd   : > { %561 = vrot.lane.b32.xlu2 %v460_v40, %s1549_s18 }
 0x2c7   : > { %539 = vrot.lane.b32.xlu0 %v460_v40, %s1550_s20 }
 0x318   : > { %v517_v58 = vpop.xlane.xlu2 %516 }
 0x319   : > { %v521_v59 = vsub.f32 %v512_v51, %v517_v58  ;;  %v1436_v58 = vld [vmem:[%s1840_s6 + $0x10] sm:$0xff] }
 0x31a   : > { %734 = vmatpush.bf16.msrb.mxu2 %v1436_v58 }
 0x31b   : > { %v523_v60 = vmul.f32 1.442695, %v521_v59  ;;  %v1435_v59 = vld [vmem:[%s1840_s6 + $0x8] sm:$0xff] }
 0x31d   : > { %1483 = vpow2.f32 %v523_v60  ;;  %v1434_v60 = vld [vmem:[%s1840_s6] sm:$0xff] }
 0x31e   : > { %735 = vmatpush.bf16.msrb.mxu2 %v1435_v59 }
 0x320   : > { %v562_v4 = vpop.permute.xlu2 %561 }
 0x321   : > { %v567_v7 = vsel %vm544_vm7, %v562_v4, 0 }
 0x322   : > { %736 = vmatpush.bf16.msrb.mxu2 %v1434_v60 }
 0x323   : > { %v1484_v61 = vpop.eup %1483 }
 0x324   : > { %v527_v62 = vsel %vm514_vm6, %v1484_v61, 0.0 }
 0x325   : > { %528 = vadd.xlane.f32.xlu1 %v527_v62 }
 0x326   : > { %v520_v63 = vpop.xlane.xlu0 %519 }
 0x327   : > { %v522_v0 = vsub.f32 %v513_v55, %v520_v63 }
 0x329   : > { %v525_v1 = vmul.f32 1.442695, %v522_v0 }
 0x32b   : > { %1485 = vpow2.f32 %v525_v1 }
 0x331   : > { %v1486_v2 = vpop.eup %1485 }
 0x332   : > { %v530_v3 = vsel %vm514_vm6, %v1486_v2, 0.0 }
 0x333   : > { %531 = vadd.xlane.f32.xlu0 %v530_v3 }
 0x339   : > { %v540_v5 = vpop.permute.xlu0 %539 }
 0x33a   : > { %v546_v6 = vsel %vm544_vm7, %v540_v5, 0 }
 0x33b   : > { %555 = vmatpush.bf16.msra.mxu3 %v546_v6 }
 0x33f   : > { %576 = vmatpush.bf16.msrb.mxu3 %v567_v7 }
 0x398   : > { %v529_v9 = vpop.xlane.xlu1 %528 }
 0x399   : > { %1487 = vrcp.f32 %v529_v9 }
 0x39f   : > { %v1488_v10 = vpop.eup %1487 }
 0x3a0   : > { %v535_v11 = vmul.f32 %v1488_v10, %v1484_v61  ;;  %v1718_v61 = vld [vmem:[%s1836_s2 + $0x8] sm:$0xff] }
 0x3a1   : > { %v653_v62 = vperm.slane %v1718_v61, 0  ;;  %v767_v39 = vperm.slane %v1718_v61, 3 }
 0x3a2   : > { %v537_v12 = vpack.c.bf16 %v535_v11, %v535_v11 }
 0x3a4   : > { %1303 = vmatmul.msk.bf16.vlgmr.msra.gmra.mxu3 %vm514_vm6, %v537_v12 }
 0x3a6   : > { %v532_v13 = vpop.xlane.xlu0 %531 }
 0x3a7   : > { %1489 = vrcp.f32 %v532_v13  ;;  %v700_v13 = vperm.slane %v1718_v61, 1 }
 0x3ad   : > { %v1490_v14 = vpop.eup %1489 }
 0x3ae   : > { %v536_v15 = vmul.f32 %v1490_v14, %v1486_v2 }
 0x3b0   : > { %v538_v16 = vpack.c.bf16 %v536_v15, %v536_v15 }
 0x3b4   : > { %1304 = vmatmul.msk.bf16.vlgmr.msrb.gmra.mxu3 %vm514_vm6, %v538_v16 }
 0x427   : > { %v557_v18 = vpop.f32.mrf.mxu3 }
 0x42f   : > { %v559_v19 = vpop.f32.mrf.mxu3 }
 0x437   : > { %v578_v20 = vpop.f32.mrf.mxu3 }
 0x438   : > { %583 = vrot.lane.b32.xlu1 %v578_v20, %s1551_s23 }
 0x43f   : > { %v580_v21 = vpop.f32.mrf.mxu3 }
 0x4aa   : > { %v584_v23 = vpop.permute.xlu1 %583 }
 0x4ab   : > { %v586_v25 = vsel %vm463_vm5, %v557_v18, %v584_v23 }
 0x4ac   : > { %v587_v26 = vpack.c.bf16 %v586_v25, %v586_v25  ;;  %v1439_v25 = vld [vmem:[%s1837_s3 + $0x18] sm:$0xff] }
 0x4ad   : > { %797 = vmatpush.bf16.msra.mxu3 %v1439_v25 }
 0x4ae   : > { %1313 = vmatmul.msk.bf16.vlgmr.msrb.gmra.mxu0 %vm386_vm0, %v587_v26  ;;  %v1438_v26 = vld [vmem:[%s1837_s3 + $0x10] sm:$0xff] }
 0x4b1   : > { %798 = vmatpush.bf16.msra.mxu3 %v1438_v26 }
 0x52b   : > { %v617_v28 = vpop.f32.mrf.mxu0 }
 0x52c   : > { %v618_v29 = vadd.f32 %v617_v28, %v592_v27 }
 0x52e   : > { %v621_v30 = vadd.f32 %v618_v29, %v1648_v31  ;;  %v1432_v31 = vld [vmem:[%s1839_s5] sm:$0xff] }
 0x52f   : > { %676 = vmatpush.bf16.msrb.mxu1 %v1432_v31 }
 0x530   : > { %v622_v32 = vsel %vm386_vm0, %v621_v30, 0.0 }
 0x531   : > { %623 = vadd.xlane.f32.xlu2 %v622_v32 }
 0x533   : > { %v619_v33 = vpop.f32.mrf.mxu0 }
 0x5a4   : > { %v624_v34 = vpop.xlane.xlu2 %623 }
 0x5a5   : > { %v625_v35 = vmul.f32 %v624_v34, %v1630_v8 }
 0x5a7   : > { %v626_v36 = vsub.f32 %v621_v30, %v625_v35 }
 0x5a9   : > { %v627_v37 = vmul.f32 %v626_v36, %v626_v36 }
 0x5ab   : > { %v628_v38 = vsel %vm386_vm0, %v627_v37, 0.0  ;;  %v765_v37 = vperm.slane %v1718_v61, 2 }
 0x5ac   : > { %629 = vadd.xlane.f32.xlu1 %v628_v38 }
 0x61f   : > { %v630_v40 = vpop.xlane.xlu1 %629 }
 0x620   : > { %v631_v41 = vmul.f32 %v630_v40, %v1630_v8 }
 0x622   : > { %v632_v42 = vadd.f32 1e-12, %v631_v41 }
 0x624   : > { %1491 = vrsqrt.f32 %v632_v42  ;;  %vm639_vm9 = vweird.f32 %v632_v42 }
 0x62a   : > { %v1492_v43 = vpop.eup %1491 }
 0x62b   : > { %v634_v44 = vmul.f32 %v1492_v43, %v632_v42  ;;  %vm640_vm8 = vweird.f32 %v1492_v43 }
 0x62c   : > { %vm641_vm10 = vmor %vm639_vm9, %vm640_vm8 }
 0x62d   : > { %v635_v45 = vmul.f32 %v1492_v43, %v634_v44 }
 0x62f   : > { %v636_v46 = vmul.f32 0.5, %v635_v45 }
 0x631   : > { %v637_v47 = vsub.f32 1.5, %v636_v46 }
 0x633   : > { %v638_v48 = vmul.f32 %v1492_v43, %v637_v47 }
 0x635   : > { %v642_v51 = vsel %vm641_vm10, %v1492_v43, %v638_v48  ;;  %v775_v43 = vperm.slane %v1718_v61, 4 }
 0x636   : > { %v643_v52 = vmul.f32 %v642_v51, %v626_v36 }
 0x638   : > { %v645_v54 = vmul.f32 %v644_v50, %v643_v52 }
 0x63a   : > { %v647_v55 = vadd.f32 %v646_v53, %v645_v54 }
 0x63c   : > { %v648_v56 = vpack.c.bf16 %v647_v55, %v647_v55 }
 0x63e   : > { %1322 = vmatmul.msk.bf16.vlgmr.msrb.gmra.mxu1 %vm386_vm0, %v648_v56 }
 0x6bb   : > { %v678_v63 = vpop.f32.mrf.mxu1 }
 0x6bc   : > { %v679_v0 = vadd.f32 %v678_v63, %v653_v62 }
 0x6be   : > { %v683_v1 = vmul.f32 0.044715, %v679_v0  ;;  %v682_v9 = vmul.f32 0.5, %v679_v0 }
 0x6c0   : > { %v684_v2 = vmul.f32 %v683_v1, %v679_v0 }
 0x6c2   : > { %v685_v3 = vmul.f32 %v684_v2, %v679_v0 }
 0x6c3   : > { %v680_v4 = vpop.f32.mrf.mxu1 }
 0x6c4   : > { %v686_v5 = vadd.f32 %v685_v3, %v679_v0 }
 0x6c6   : > { %v687_v6 = vmul.f32 0.7978846, %v686_v5 }
 0x6c8   : > { %1493 = vtanh.f32 %v687_v6 }
 0x6ce   : > { %v1494_v7 = vpop.eup %1493 }
 0x6cf   : > { %v689_v10 = vadd.f32 1.0, %v1494_v7 }
 0x6d1   : > { %v690_v11 = vmul.f32 %v689_v10, %v682_v9 }
 0x6d3   : > { %v691_v12 = vpack.c.bf16 %v690_v11, %v690_v11 }
 0x6d5   : > { %1339 = vmatmul.msk.bf16.vlgmr.msrb.gmra.mxu2 %vm725_vm11, %v691_v12 }
 0x758   : > { %v738_v14 = vpop.f32.mrf.mxu2 }
 0x759   : > { %v739_v15 = vadd.f32 %v738_v14, %v700_v13 }
 0x75b   : > { %v742_v16 = vadd.f32 %v739_v15, %v647_v55 }
 0x75d   : > { %v743_v17 = vsel %vm386_vm0, %v742_v16, 0.0 }
 0x75e   : > { %744 = vadd.xlane.f32.xlu0 %v743_v17 }
 0x760   : > { %v740_v18 = vpop.f32.mrf.mxu2 }
 0x7d1   : > { %v745_v19 = vpop.xlane.xlu0 %744 }
 0x7d2   : > { %v746_v20 = vmul.f32 %v745_v19, %v1630_v8 }
 0x7d4   : > { %v747_v21 = vsub.f32 %v742_v16, %v746_v20 }
 0x7d6   : > { %v748_v22 = vmul.f32 %v747_v21, %v747_v21 }
 0x7d8   : > { %v749_v23 = vsel %vm386_vm0, %v748_v22, 0.0 }
 0x7d9   : > { %750 = vadd.xlane.f32.xlu0 %v749_v23 }
 0x84c   : > { %v751_v27 = vpop.xlane.xlu0 %750 }
 0x84d   : > { %v752_v28 = vmul.f32 %v751_v27, %v1630_v8 }
 0x84f   : > { %v753_v29 = vadd.f32 1e-12, %v752_v28  ;;  %v1441_v28 = vld [vmem:[%s1838_s4 + $0x18] sm:$0xff] }
 0x851   : > { %1495 = vrsqrt.f32 %v753_v29  ;;  %vm760_vm13 = vweird.f32 %v753_v29 }
 0x857   : > { %v1496_v30 = vpop.eup %1495 }
 0x858   : > { %v755_v32 = vmul.f32 %v1496_v30, %v753_v29  ;;  %vm761_vm12 = vweird.f32 %v1496_v30 }
 0x859   : > { %vm762_vm14 = vmor %vm760_vm13, %vm761_vm12 }
 0x85a   : > { %v756_v33 = vmul.f32 %v1496_v30, %v755_v32 }
 0x85c   : > { %v757_v34 = vmul.f32 0.5, %v756_v33 }
 0x85e   : > { %v758_v35 = vsub.f32 1.5, %v757_v34  ;;  %v1440_v34 = vld [vmem:[%s1838_s4 + $0x10] sm:$0xff] }
 0x860   : > { %v759_v36 = vmul.f32 %v1496_v30, %v758_v35 }
 0x862   : > { %v763_v38 = vsel %vm762_vm14, %v1496_v30, %v759_v36 }
 0x863   : > { %v764_v31 = vmul.f32 %v763_v38, %v747_v21  ;;  %v936_v38 = vperm.slane %v1718_v61, 5 }
 0x865   : > { %v766_v40 = vmul.f32 %v765_v37, %v764_v31 }
 0x867   : > { %v1735_v41 = vadd.f32 %v767_v39, %v766_v40 }
 0x869   : > { %v769_v42 = vpack.c.bf16 %v1735_v41, %v1735_v41 }
 0x86b   : > { %1352 = vmatmul.msk.bf16.vlgmr.msra.gmra.mxu3 %vm386_vm0, %v769_v42 }
 0x8ee   : > { %v800_v44 = vpop.f32.mrf.mxu3 }
 0x8ef   : > { %v801_v45 = vadd.f32 %v800_v44, %v775_v43 }
 0x8f1   : > { %v804_v46 = vmul.f32 0.25, %v801_v45  ;;  %v806_v47 = vpack.c.bf16 %v801_v45, %v801_v45 }
 0x8f3   : > { %v805_v48 = vpack.c.bf16 %v804_v46, %v804_v46  ;;  %v808_v50 = vunpack.c.l.b16 %v806_v47 }
 0x8f5   : > { %v809_v51 = vpack.c.b16 %v808_v50, %v808_v50  ;;  %v832_v52 = vunpack.c.l.b16 %v805_v48  ;;  %v1443_v50 = vld [vmem:[%s1839_s5 + $0x18] sm:$0xff] }
 0x8f6   : > { %v802_v53 = vpop.f32.mrf.mxu3 }
 0x8f7   : > { %836 = vrot.lane.b32.xlu0 %v809_v51, %s1548_s17  ;;  %v833_v54 = vpack.c.b16 %v832_v52, %v832_v52 }
 0x8f9   : > { %834 = vrot.lane.b32.xlu2 %v833_v54, %s1547_s11 }
 0x8ff   : > { %810 = vrot.lane.b32.xlu0 %v809_v51, %s1546_s30 }
 0x901   : > { %904 = vrot.lane.b32.xlu2 %v809_v51, %s1549_s18 }
 0x909   : > { %883 = vrot.lane.b32.xlu2 %v809_v51, %s1550_s20 }
 0x953   : > { %v835_v55 = vpop.permute.xlu2 %834 }
 0x95b   : > { %v905_v56 = vpop.permute.xlu2 %904 }
 0x95c   : > { %v910_v57 = vsel %vm544_vm7, %v905_v56, 0 }
 0x95d   : > { %919 = vmatpush.bf16.msrb.mxu3 %v910_v57 }
 0x963   : > { %v884_v58 = vpop.permute.xlu2 %883 }
 0x964   : > { %v889_v59 = vsel %vm544_vm7, %v884_v58, 0  ;;  %vm1190_vm7 = vcmask 1040384  }
 0x965   : > { %898 = vmatpush.bf16.msra.mxu2 %v889_v59 }
 0x969   : > { %v837_v60 = vpop.permute.xlu0 %836 }
 0x96a   : > { %v842_v62 = vsel %vm463_vm5, %v837_v60, 0  ;;  %v988_v60 = vperm.slane %v1718_v61, 6 }
 0x96b   : > { %851 = vmatpush.bf16.xpose.msra.mxu1 %v842_v62 }
 0x971   : > { %v811_v63 = vpop.permute.xlu0 %810 }
 0x972   : > { %v816_v0 = vsel %vm463_vm5, %v811_v63, 0  ;;  %1354 = vmatmul.msk.bf16.vlgmr.msra.gmra.mxu1 %vm463_vm5, %v835_v55  ;;  %v990_v63 = vperm.slane %v1718_v61, 7  ;;  %v1445_v61 = vld [vmem:[%s1840_s6 + $0x28] sm:$0xff] }
 0x973   : > { %825 = vmatpush.bf16.xpose.msra.mxu0 %v816_v0  ;;  %1020 = vmatpush.bf16.msrb.mxu1 %v1443_v50 }
 0x97a   : > { %1353 = vmatmul.msk.bf16.vlgmr.msra.gmra.mxu0 %vm463_vm5, %v805_v48 }
 0x97b   : > { %958 = vmatpush.bf16.msrb.mxu0 %v1441_v28 }
 0x97f   : > { %959 = vmatpush.bf16.msrb.mxu0 %v1440_v34 }
 0x9ef   : > { %v853_v1 = vpop.f32.mrf.mxu1 }
 0x9f0   : > { %v858_v2 = vadd.f32 %v1665_v49, %v853_v1 }
 0x9f2   : > { %v862_v3 = vsel %vm514_vm6, %v858_v2, -inf }
 0x9f3   : > { %863 = vmax.xlane.f32.xlu1 %v862_v3 }
 0x9f7   : > { %v827_v4 = vpop.f32.mrf.mxu0  ;;  %v855_v5 = vpop.f32.mrf.mxu1 }
 0x9f8   : > { %v857_v6 = vadd.f32 %v1665_v49, %v827_v4  ;;  %v1447_v4 = vld [vmem:[%s1840_s6 + $0x38] sm:$0xff]  ;;  %v1446_v5 = vld [vmem:[%s1840_s6 + $0x30] sm:$0xff] }
 0x9f9   : > { %1078 = vmatpush.bf16.msrb.mxu2 %v1447_v4 }
 0x9fa   : > { %v859_v7 = vsel %vm514_vm6, %v857_v6, -inf }
 0x9fb   : > { %860 = vmax.xlane.f32.xlu0 %v859_v7  ;;  %v384_v7 = vld [vmem:[%s1836_s2 + $0x10] sm:$0xf] }
 0x9fd   : > { %1079 = vmatpush.bf16.msrb.mxu2 %v1446_v5 }
 0x9ff   : > { %v829_v9 = vpop.f32.mrf.mxu0 }
 0xa00   : > { %v998_v9 = vperm.slane %v384_v7, 0 }
 0xa01   : > { %1080 = vmatpush.bf16.msrb.mxu2 %v1445_v61 }
 0xa66   : > { %v864_v10 = vpop.xlane.xlu1 %863 }
 0xa67   : > { %v866_v11 = vsub.f32 %v858_v2, %v864_v10 }
 0xa69   : > { %v869_v12 = vmul.f32 1.442695, %v866_v11 }
 0xa6b   : > { %1497 = vpow2.f32 %v869_v12 }
 0xa6e   : > { %v861_v13 = vpop.xlane.xlu0 %860 }
 0xa6f   : > { %v865_v14 = vsub.f32 %v857_v6, %v861_v13  ;;  %v1444_v6 = vld [vmem:[%s1840_s6 + $0x20] sm:$0xff] }
 0xa70   : > { %1081 = vmatpush.bf16.msrb.mxu2 %v1444_v6 }
 0xa71   : > { %v1498_v15 = vpop.eup %1497  ;;  %v867_v16 = vmul.f32 1.442695, %v865_v14 }
 0xa72   : > { %v874_v17 = vsel %vm514_vm6, %v1498_v15, 0.0 }
 0xa73   : > { %1499 = vpow2.f32 %v867_v16  ;;  %875 = vadd.xlane.f32.xlu1 %v874_v17 }
 0xa79   : > { %v1500_v18 = vpop.eup %1499 }
 0xa7a   : > { %v871_v19 = vsel %vm514_vm6, %v1500_v18, 0.0 }
 0xa7b   : > { %872 = vadd.xlane.f32.xlu1 %v871_v19 }
 0xae6   : > { %v876_v49 = vpop.xlane.xlu1 %875 }
 0xae7   : > { %1501 = vrcp.f32 %v876_v49 }
 0xaed   : > { %v1502_v20 = vpop.eup %1501 }
 0xaee   : > { %v880_v21 = vmul.f32 %v1502_v20, %v1498_v15  ;;  %v873_v22 = vpop.xlane.xlu1 %872 }
 0xaef   : > { %1503 = vrcp.f32 %v873_v22  ;;  %v1046_v22 = vperm.slane %v384_v7, 1 }
 0xaf0   : > { %v882_v23 = vpack.c.bf16 %v880_v21, %v880_v21 }
 0xaf2   : > { %1356 = vmatmul.msk.bf16.vlgmr.msrb.gmra.mxu3 %vm514_vm6, %v882_v23 }
 0xaf5   : > { %v1504_v25 = vpop.eup %1503 }
 0xaf6   : > { %v879_v26 = vmul.f32 %v1504_v25, %v1500_v18 }
 0xaf8   : > { %v881_v27 = vpack.c.bf16 %v879_v26, %v879_v26 }
 0xafa   : > { %1355 = vmatmul.msk.bf16.vlgmr.msra.gmra.mxu2 %vm514_vm6, %v881_v27 }
 0xb75   : > { %v921_v29 = vpop.f32.mrf.mxu3 }
 0xb76   : > { %926 = vrot.lane.b32.xlu1 %v921_v29, %s1551_s23 }
 0xb7d   : > { %v900_v30 = vpop.f32.mrf.mxu2  ;;  %v923_v32 = vpop.f32.mrf.mxu3 }
 0xb85   : > { %v902_v33 = vpop.f32.mrf.mxu2 }
 0xbe8   : > { %v927_v35 = vpop.permute.xlu1 %926 }
 0xbe9   : > { %v929_v36 = vsel %vm463_vm5, %v900_v30, %v927_v35  ;;  %v1449_v35 = vld [vmem:[%s1841_s7 + $0x8] sm:$0xff] }
 0xbea   : > { %v930_v37 = vpack.c.bf16 %v929_v36, %v929_v36  ;;  %1143 = vmatpush.bf16.msra.mxu3 %v1449_v35  ;;  %v1448_v36 = vld [vmem:[%s1841_s7] sm:$0xff] }
 0xbec   : > { %1369 = vmatmul.msk.bf16.vlgmr.msrb.gmra.mxu0 %vm386_vm0, %v930_v37 }
 0xbee   : > { %1144 = vmatpush.bf16.msra.mxu3 %v1448_v36 }
 0xc69   : > { %v961_v39 = vpop.f32.mrf.mxu0 }
 0xc6a   : > { %v962_v31 = vadd.f32 %v961_v39, %v936_v38 }
 0xc6c   : > { %v965_v40 = vadd.f32 %v962_v31, %v1735_v41  ;;  %v1442_v41 = vld [vmem:[%s1839_s5 + $0x10] sm:$0xff] }
 0xc6d   : > { %1021 = vmatpush.bf16.msrb.mxu1 %v1442_v41 }
 0xc6e   : > { %v966_v42 = vsel %vm386_vm0, %v965_v40, 0.0 }
 0xc6f   : > { %967 = vadd.xlane.f32.xlu2 %v966_v42 }
 0xc71   : > { %v963_v43 = vpop.f32.mrf.mxu0 }
 0xce2   : > { %v968_v44 = vpop.xlane.xlu2 %967 }
 0xce3   : > { %v969_v45 = vmul.f32 %v968_v44, %v1630_v8 }
 0xce5   : > { %v970_v46 = vsub.f32 %v965_v40, %v969_v45 }
 0xce7   : > { %v971_v47 = vmul.f32 %v970_v46, %v970_v46 }
 0xce9   : > { %v972_v48 = vsel %vm386_vm0, %v971_v47, 0.0 }
 0xcea   : > { %973 = vadd.xlane.f32.xlu0 %v972_v48  ;;  %v1112_v48 = vperm.slane %v384_v7, 3 }
 0xd5d   : > { %v974_v51 = vpop.xlane.xlu0 %973 }
 0xd5e   : > { %v975_v52 = vmul.f32 %v974_v51, %v1630_v8 }
 0xd60   : > { %v976_v53 = vadd.f32 1e-12, %v975_v52 }
 0xd62   : > { %1505 = vrsqrt.f32 %v976_v53  ;;  %vm983_vm1 = vweird.f32 %v976_v53 }
 0xd68   : > { %v1506_v54 = vpop.eup %1505 }
 0xd69   : > { %v978_v55 = vmul.f32 %v1506_v54, %v976_v53  ;;  %vm984_vm15 = vweird.f32 %v1506_v54  ;;  %v1450_v53 = vld [vmem:[%s1842_s8] sm:$0xff] }
 0xd6a   : > { %vm985_vm2 = vmor %vm983_vm1, %vm984_vm15 }
 0xd6b   : > { %v979_v56 = vmul.f32 %v1506_v54, %v978_v55 }
 0xd6d   : > { %v980_v57 = vmul.f32 0.5, %v979_v56 }
 0xd6f   : > { %v981_v58 = vsub.f32 1.5, %v980_v57 }
 0xd71   : > { %v982_v59 = vmul.f32 %v1506_v54, %v981_v58 }
 0xd73   : > { %v986_v62 = vsel %vm985_vm2, %v1506_v54, %v982_v59  ;;  %v1132_v54 = vrot.slane %v1644_v24, 2 }
 0xd74   : > { %v987_v0 = vmul.f32 %v986_v62, %v970_v46  ;;  %v1110_v46 = vperm.slane %v384_v7, 2 }
 0xd76   : > { %v989_v1 = vmul.f32 %v988_v60, %v987_v0  ;;  %v1186_v60 = vlaneseq }
 0xd78   : > { %v991_v2 = vadd.f32 %v990_v63, %v989_v1  ;;  %v1187_v62 = vand.u32 127, %v1186_v60  ;;  %v1168_v63 = vrot.slane %v1644_v24, 3 }
 0xd7a   : > { %v992_v3 = vpack.c.bf16 %v991_v2, %v991_v2  ;;  %vm1188_vm6 = vcmp.lt.s32.totalorder %v1187_v62, 2  ;;  %vm1213_vm8 = vcmp.eq.s32.totalorder %v1187_v62, 127 }
 0xd7c   : > { %1382 = vmatmul.msk.bf16.vlgmr.msrb.gmra.mxu1 %vm386_vm0, %v992_v3 }
 0xdf9   : > { %v1023_v10 = vpop.f32.mrf.mxu1 }
 0xdfa   : > { %v1024_v11 = vadd.f32 %v1023_v10, %v998_v9 }
 0xdfc   : > { %v1028_v12 = vmul.f32 0.044715, %v1024_v11  ;;  %v1027_v19 = vmul.f32 0.5, %v1024_v11 }
 0xdfe   : > { %v1029_v13 = vmul.f32 %v1028_v12, %v1024_v11 }
 0xe00   : > { %v1030_v14 = vmul.f32 %v1029_v13, %v1024_v11 }
 0xe01   : > { %v1025_v15 = vpop.f32.mrf.mxu1 }
 0xe02   : > { %v1031_v16 = vadd.f32 %v1030_v14, %v1024_v11  ;;  %v1205_v11 = vstv %s1204_s25 }
 0xe04   : > { %v1032_v17 = vmul.f32 0.7978846, %v1031_v16 }
 0xe06   : > { %1507 = vtanh.f32 %v1032_v17 }
 0xe0c   : > { %v1508_v18 = vpop.eup %1507 }
 0xe0d   : > { %v1034_v49 = vadd.f32 1.0, %v1508_v18 }
 0xe0f   : > { %v1035_v20 = vmul.f32 %v1034_v49, %v1027_v19 }
 0xe11   : > { %v1036_v21 = vpack.c.bf16 %v1035_v20, %v1035_v20 }
 0xe13   : > { %1407 = vmatmul.msk.bf16.vlgmr.msrb.gmra.mxu2 %vm725_vm11, %v1036_v21 }
 0xe96   : > { %v1083_v23 = vpop.f32.mrf.mxu2 }
 0xe97   : > { %v1084_v25 = vadd.f32 %v1083_v23, %v1046_v22 }
 0xe99   : > { %v1087_v26 = vadd.f32 %v1084_v25, %v991_v2 }
 0xe9b   : > { %v1088_v27 = vsel %vm386_vm0, %v1087_v26, 0.0 }
 0xe9c   : > { %1089 = vadd.xlane.f32.xlu1 %v1088_v27 }
 0xe9e   : > { %v1085_v28 = vpop.f32.mrf.mxu2 }
 0xf0f   : > { %v1090_v29 = vpop.xlane.xlu1 %1089 }
 0xf10   : > { %v1091_v30 = vmul.f32 %v1090_v29, %v1630_v8 }
 0xf12   : > { %v1092_v32 = vsub.f32 %v1087_v26, %v1091_v30 }
 0xf14   : > { %v1093_v33 = vmul.f32 %v1092_v32, %v1092_v32 }
 0xf16   : > { %v1094_v34 = vsel %vm386_vm0, %v1093_v33, 0.0 }
 0xf17   : > { %1095 = vadd.xlane.f32.xlu0 %v1094_v34 }
 0xf8a   : > { %v1096_v37 = vpop.xlane.xlu0 %1095 }
 0xf8b   : > { %v1097_v38 = vmul.f32 %v1096_v37, %v1630_v8  ;;  %v1451_v8 = vld [vmem:[%s1842_s8 + $0x8] sm:$0xff] }
 0xf8c   : > { %1179 = vmatpush.bf16.msra.mxu0 %v1451_v8 }
 0xf8d   : > { %v1098_v39 = vadd.f32 1e-12, %v1097_v38 }
 0xf8f   : > { %1509 = vrsqrt.f32 %v1098_v39  ;;  %vm1105_vm4 = vweird.f32 %v1098_v39 }
 0xf90   : > { %1180 = vmatpush.bf16.msra.mxu0 %v1450_v53 }
 0xf95   : > { %v1510_v31 = vpop.eup %1509 }
 0xf96   : > { %v1100_v40 = vmul.f32 %v1510_v31, %v1098_v39  ;;  %vm1106_vm3 = vweird.f32 %v1510_v31 }
 0xf97   : > { %vm1107_vm5 = vmor %vm1105_vm4, %vm1106_vm3 }
 0xf98   : > { %v1101_v42 = vmul.f32 %v1510_v31, %v1100_v40 }
 0xf9a   : > { %v1102_v43 = vmul.f32 0.5, %v1101_v42 }
 0xf9c   : > { %v1103_v44 = vsub.f32 1.5, %v1102_v43 }
 0xf9e   : > { %v1104_v45 = vmul.f32 %v1510_v31, %v1103_v44 }
 0xfa0   : > { %v1108_v47 = vsel %vm1107_vm5, %v1510_v31, %v1104_v45 }
 0xfa1   : > { %v1109_v50 = vmul.f32 %v1108_v47, %v1092_v32 }
 0xfa3   : > { %v1111_v41 = vmul.f32 %v1110_v46, %v1109_v50 }
 0xfa5   : > { %v1113_v51 = vadd.f32 %v1112_v48, %v1111_v41 }
 0xfa7   : > { %v1114_v52 = vpack.c.bf16 %v1113_v51, %v1113_v51 }
 0xfa9   : > { %1416 = vmatmul.msk.bf16.vlgmr.msra.gmra.mxu3 %vm386_vm0, %v1114_v52 }
0x102c   : > { %v1146_v55 = vpop.f32.mrf.mxu3 }
0x102d   : > { %v1147_v56 = vadd.f32 %v1146_v55, %v1132_v54 }
0x102f   : > { %1511 = vtanh.f32 %v1147_v56 }
0x1034   : > { %v1148_v57 = vpop.f32.mrf.mxu3 }
0x1035   : > { %v1512_v58 = vpop.eup %1511 }
0x1036   : > { %v1151_v59 = vpack.c.bf16 %v1512_v58, %v1512_v58 }
0x1038   : > { %1425 = vmatmul.msk.bf16.vlgmr.msra.gmra.mxu0 %vm386_vm0, %v1151_v59  ;;  %vm1206_vm0 = vcmp.eq.s32.totalorder %v1187_v62, %v1205_v11 }
0x10b5   : > { %v1182_v0 = vpop.f32.mrf.mxu0 }
0x10b6   : > { %v1183_v1 = vadd.f32 %v1182_v0, %v1168_v63 }
0x10b8   : > { %v1189_v2 = vsel %vm1188_vm6, %v1183_v1, -1e+30  ;;  %v1212_v19 = vsel %vm1188_vm6, %v1183_v1, 0.0 }
0x10b9   : > { %v1191_v3 = vsel %vm1190_vm7, %v1189_v2, -inf }
0x10ba   : > { %1192 = vmax.xlane.f32.xlu0 %v1191_v3 }
0x10bd   : > { %v1184_v4 = vpop.f32.mrf.mxu0 }
0x112d   : > { %v1193_v5 = vpop.xlane.xlu0 %1192 }
0x112e   : > { %v1194_v61 = vsub.f32 %v1189_v2, %v1193_v5 }
0x1130   : > { %v1195_v6 = vmul.f32 1.442695, %v1194_v61 }
0x1132   : > { %1513 = vpow2.f32 %v1195_v6 }
0x1138   : > { %v1514_v7 = vpop.eup %1513 }
0x1139   : > { %v1197_v9 = vsel %vm1188_vm6, %v1514_v7, 0.0 }
0x113a   : > { %v1198_v24 = vsel %vm1190_vm7, %v1197_v9, 0.0 }
0x113b   : > { %1199 = vadd.xlane.f32.xlu2 %v1198_v24 }
0x11ae   : > { %v1200_v10 = vpop.xlane.xlu2 %1199 }
0x11af   : > { %1515 = vlog2.f32 %v1200_v10 }
0x11b5   : > { %v1516_v12 = vpop.eup %1515 }
0x11b6   : > { %v1202_v13 = vmul.f32 0.6931472, %v1516_v12 }
0x11b8   : > { %v1203_v14 = vsub.f32 %v1194_v61, %v1202_v13 }
0x11ba   : > { %v1207_v15 = vsel %vm1206_vm0, %v1203_v14, 0.0 }
0x11bb   : > { %v1208_v16 = vsel %vm1190_vm7, %v1207_v15, 0.0 }
0x11bc   : > { %1209 = vadd.xlane.f32.xlu0 %v1208_v16 }
0x122f   : > { %v1210_v17 = vpop.xlane.xlu0 %1209 }
0x1230   : > { %v1211_v18 = vsub.f32 0.0, %v1210_v17 }
0x1232   : > { %v1214_v49 = vsel %vm1213_vm8, %v1211_v18, %v1212_v19 }
0x1233   : > { %1215 = vst [vmem:[%s380_s28] sm:$0x1] %v1214_v49 }
0x1234 PF: > { %s21_s13 = sadd.s32 1, %s1542_s13  }
0x1235   : > { %p18_p7 = scmp.ge.s32.totalorder %s21_s13, 4  }
0x1237   :  { %20 = sbr.rel (!%p18_p7) target bundleno = 1 (0x1), region = 102 }
0x123c   :  { %1233 = vsyncpa [#allocation3], 1 }
0x123d   :  { %1235 = vsyncpa [#allocation3 + $0x1], 1 }

</bundles_post_ra>
